<compile_context>
chip_gen: v7x
topology: tpu7x:2x2x1
jax: 0.10.0
libtpu: 0.0.40
codegen_flags: <defaults>
</compile_context>

<pallas_src>
import functools
import math

import jax
import jax.numpy as jnp
from jax.experimental import pallas as pl
from jax.experimental.pallas import tpu as pltpu

BANDS = 32          # self.bands (small synthetic value)
NUM_CLASSES = 4     # self.number_of_classes
VEC_LEN = 16        # hidden width of fc_out's first Linear / LayerNorm
LN_EPS = 1e-5
LANES = 128

# ---- packed parameter slab layout (lane-padded to 128, statically known) ----
_R_FC1 = 0                    # rows [0, BANDS)         : fc1 weight (bands,16) in lanes [0,16)
_R_FC2 = BANDS                # rows [BANDS, BANDS+128) : fc2 weight (16,classes) padded to (128,128)
_R_VEC = _R_FC2 + LANES       # rows [_R_VEC, _R_VEC+8) : small vectors, one per row
_VEC_POS, _VEC_FC1B, _VEC_LNW, _VEC_LNB, _VEC_FC2B = 0, 1, 2, 3, 4
_SLAB_ROWS = _R_VEC + 8       # 168 rows (multiple of 8)
assert _R_FC2 % 8 == 0 and _R_VEC % 8 == 0 and BANDS <= LANES


# ----------------------------------------------------------------------------
# Fused kernel
# ----------------------------------------------------------------------------
def _make_kernel(batch, bands):
    inv_bq = 1.0 / float(batch * bands)
    inv_vec = 1.0 / float(VEC_LEN)
    inv_sqrt2 = 1.0 / math.sqrt(2.0)
    n = bands * batch

    def kernel(proj_ref, mode_ref, x_ref, p_ref, y_ref, ba_ref):
        # SMEM scalars.  embed_dim=1 so the q/k projections are scalars.
        wq = proj_ref[0]
        bq = proj_ref[1]
        wk = proj_ref[2]
        bk = proj_ref[3]
        flag_f = (mode_ref[0] > 0).astype(jnp.float32)   # 1.0: threshold mode, 0.0: +0.1 offset
        k_f = mode_ref[1].astype(jnp.float32)            # number of bands to keep (threshold mode)

        # One aligned (8,128) load for all small vectors (zero lane-padded).
        vecs = p_ref[_R_VEC:_R_VEC + 8, :]
        pos = vecs[_VEC_POS:_VEC_POS + 1, 0:bands]       # (1, bands)
        fc1_b = vecs[_VEC_FC1B:_VEC_FC1B + 1, :]         # (1, 128)
        ln_w = vecs[_VEC_LNW:_VEC_LNW + 1, :]
        ln_b = vecs[_VEC_LNB:_VEC_LNB + 1, :]
        fc2_b = vecs[_VEC_FC2B:_VEC_FC2B + 1, :]

        x = x_ref[...]                                   # (B, bands)
        xp = x + pos
        xp_t = jnp.transpose(xp)                         # (bands, B)
        q_t = xp_t * wq + bq                             # q_t[i, b] = q[b, i]
        k_t = xp_t * wk + bk                             # k_t[j, b] = k[b, j]

        # Lane-dense scores: softmax axis j on sublanes, query index c = i*B + b on lanes.
        # scores[j, c] = k[b, j] * q[b, i]   (head_dim = 1 => scale = 1)
        k_rep = jnp.tile(k_t, (1, bands))                # (bands, n): k_rep[j, i*B+b] = k[b, j]
        qq = jnp.tile(q_t, (1, bands))                   # qq[i', i*B+b] = q[b, i']
        rid = jax.lax.broadcasted_iota(jnp.int32, (bands, n), 0)
        cid = jax.lax.broadcasted_iota(jnp.int32, (bands, n), 1)
        sel = (cid >= rid * batch) & (cid < (rid + 1) * batch)
        q_flat = jnp.sum(jnp.where(sel, qq, 0.0), axis=0, keepdims=True)   # (1, n): q[b, i] at lane i*B+b
        scores = k_rep * q_flat                          # (bands, n)

        m = jnp.max(scores, axis=0, keepdims=True)       # (1, n)
        e = jnp.exp(scores - m)
        p = e / jnp.sum(e, axis=0, keepdims=True)        # softmax over bands_j (exact divide)

        # mean over heads (=1), queries and batch == one lane reduction over n columns.
        w_col = jnp.sum(p, axis=1, keepdims=True) * inv_bq        # (bands, 1)

        # (bands,1) -> (1,bands) via iota-select (avoids a lane-collapsing reshape).
        r32 = jax.lax.broadcasted_iota(jnp.int32, (bands, bands), 0)
        c32 = jax.lax.broadcasted_iota(jnp.int32, (bands, bands), 1)
        w_row = jnp.sum(jnp.where(r32 == c32, w_col, 0.0), axis=0, keepdims=True)   # (1, bands)

        # min-max normalization (guarded: torch would NaN when all values are equal).
        wmin = jnp.min(w_row, axis=-1, keepdims=True)
        rng = jnp.max(w_row, axis=-1, keepdims=True) - wmin
        safe_rng = jnp.where(rng > 0.0, rng, 1.0)
        ba = (w_row - wmin) / safe_rng                    # (1, bands)

        # epoch >= 400: k-th largest value as threshold, computed in-kernel.
        # rank_j = #{i : w_i > w_j}; threshold = min{ba_j : rank_j < k}  (== topk(ba,k)[-1]).
        ranks = jnp.sum((w_col > w_row).astype(jnp.float32), axis=0, keepdims=True)  # (1, bands)
        thresh = jnp.min(jnp.where(ranks < k_f, ba, 1e30), axis=-1, keepdims=True)
        ba_thr = jnp.where(ba < thresh, 0.0, ba)          # values == threshold are kept (torch parity)
        ba_final = flag_f * ba_thr + (1.0 - flag_f) * (ba + 0.1)

        # ---- classification head (kept 128-lane dense): Linear -> LN -> GELU -> Linear ----
        xs = x * ba_final                                  # (B, bands)
        fc1_w = p_ref[_R_FC1:_R_FC1 + bands, :]            # (bands, 128), lanes >= 16 are zero
        h = jnp.dot(xs, fc1_w, precision=jax.lax.Precision.HIGHEST,
                    preferred_element_type=jnp.float32) + fc1_b   # (B, 128), lanes >= 16 exactly 0

        lane = jax.lax.broadcasted_iota(jnp.int32, (batch, LANES), 1)
        mu = jnp.sum(h, axis=-1, keepdims=True) * inv_vec          # padded lanes contribute 0
        hc = jnp.where(lane < VEC_LEN, h - mu, 0.0)
        var = jnp.sum(hc * hc, axis=-1, keepdims=True) * inv_vec
        hn = hc * jax.lax.rsqrt(var + LN_EPS) * ln_w + ln_b        # padded lanes stay 0

        # exact GELU to match PyTorch nn.GELU default.
        g = hn * 0.5 * (1.0 + jax.lax.erf(hn * inv_sqrt2))

        fc2_w = p_ref[_R_FC2:_R_FC2 + LANES, :]            # (128, 128), rows >= 16 / cols >= classes zero
        y = jnp.dot(g, fc2_w, precision=jax.lax.Precision.HIGHEST,
                    preferred_element_type=jnp.float32) + fc2_b    # (B, 128), lanes >= classes are 0

        # Single full-block stores (no zero-fill + masked overwrite pair).
        y_ref[...] = y
        ba_ref[...] = jnp.broadcast_to(ba_final, (8, bands))

    return kernel


@functools.lru_cache(maxsize=None)
def _build_fused(batch, bands):
    call = pl.pallas_call(
        _make_kernel(batch, bands),
        out_shape=(jax.ShapeDtypeStruct((batch, LANES), jnp.float32),
                   jax.ShapeDtypeStruct((8, bands), jnp.float32)),
        in_specs=[pl.BlockSpec(memory_space=pltpu.MemorySpace.SMEM),   # proj scalars
                  pl.BlockSpec(memory_space=pltpu.MemorySpace.SMEM),   # [flag, k]
                  pl.BlockSpec(memory_space=pltpu.MemorySpace.VMEM),   # x
                  pl.BlockSpec(memory_space=pltpu.MemorySpace.VMEM)],  # param slab
        out_specs=(pl.BlockSpec(memory_space=pltpu.MemorySpace.VMEM),
                   pl.BlockSpec(memory_space=pltpu.MemorySpace.VMEM)),
    )
    return jax.jit(call)


# ----------------------------------------------------------------------------
# Parameter init (deterministic, synthetic — shapes per TFormer.__init__)
# ----------------------------------------------------------------------------
def init_params(key):
    ks = jax.random.split(key, 6)
    # nn.MultiheadAttention(1, 1): in_proj_weight (3,1), in_proj_bias (3,).
    # Only the q/k rows influence attn_weights; v and out_proj are dead code here.
    in_proj_w = jax.random.normal(ks[0], (3, 1), jnp.float32)
    in_proj_b = jax.random.normal(ks[1], (3,), jnp.float32) * 0.1
    proj = jnp.array([in_proj_w[0, 0], in_proj_b[0],
                      in_proj_w[1, 0], in_proj_b[1]], jnp.float32)

    pos = jnp.zeros((BANDS,), jnp.float32)   # nn.Parameter(torch.zeros(1, bands, 1))

    # fc_out: Linear(bands,16) -> LayerNorm(16) -> GELU -> Linear(16, classes)
    fc1_w = jax.random.normal(ks[2], (VEC_LEN, BANDS), jnp.float32) / math.sqrt(BANDS)
    fc1_b = jax.random.normal(ks[3], (VEC_LEN,), jnp.float32) * 0.01
    ln_w = jnp.ones((VEC_LEN,), jnp.float32)
    ln_b = jnp.zeros((VEC_LEN,), jnp.float32)
    fc2_w = jax.random.normal(ks[4], (NUM_CLASSES, VEC_LEN), jnp.float32) / math.sqrt(VEC_LEN)
    fc2_b = jax.random.normal(ks[5], (NUM_CLASSES,), jnp.float32) * 0.01

    # Pack everything into one lane-padded (168, 128) slab => single VMEM DMA (~86 KiB).
    slab = jnp.zeros((_SLAB_ROWS, LANES), jnp.float32)
    slab = slab.at[_R_FC1:_R_FC1 + BANDS, 0:VEC_LEN].set(fc1_w.T)          # x @ W form
    slab = slab.at[_R_FC2:_R_FC2 + VEC_LEN, 0:NUM_CLASSES].set(fc2_w.T)
    slab = slab.at[_R_VEC + _VEC_POS, 0:BANDS].set(pos)
    slab = slab.at[_R_VEC + _VEC_FC1B, 0:VEC_LEN].set(fc1_b)
    slab = slab.at[_R_VEC + _VEC_LNW, 0:VEC_LEN].set(ln_w)
    slab = slab.at[_R_VEC + _VEC_LNB, 0:VEC_LEN].set(ln_b)
    slab = slab.at[_R_VEC + _VEC_FC2B, 0:NUM_CLASSES].set(fc2_b)

    return dict(proj=proj, slab=slab)


# ----------------------------------------------------------------------------
# Full forward: ONE kernel launch for both epoch regimes (flag/k are SMEM data)
# ----------------------------------------------------------------------------
def tformer_forward(params, x, epoch):
    b, bands = x.shape          # b % 8 == 0 keeps the output stores unmasked (not required)
    if epoch < 400:
        flag, k = 0, 1          # k unused on this path
    else:
        dk = (180 - 50) / (500 - 400) * (epoch - 400)
        k = int(180 - dk)
        # TODO(synk): the original assumes bands >= 180; clamp k for small synthetic bands.
        k = max(1, min(k, bands))
        flag = 1
    mode = jnp.array([flag, k], dtype=jnp.int32)
    y_pad, ba_rows = _build_fused(b, bands)(params["proj"], mode, x, params["slab"])
    return y_pad[:, :NUM_CLASSES], ba_rows[0]


# ----------------------------------------------------------------------------
# Plain-JAX reference (mirrors the torch forward) for a correctness check
# ----------------------------------------------------------------------------
def tformer_reference(params, x, epoch):
    proj, slab = params["proj"], params["slab"]
    wq, bq, wk, bk = proj[0], proj[1], proj[2], proj[3]
    pos = slab[_R_VEC + _VEC_POS, :BANDS]
    fc1_w = slab[_R_FC1:_R_FC1 + BANDS, :VEC_LEN]
    fc1_b = slab[_R_VEC + _VEC_FC1B, :VEC_LEN]
    ln_w = slab[_R_VEC + _VEC_LNW, :VEC_LEN]
    ln_b = slab[_R_VEC + _VEC_LNB, :VEC_LEN]
    fc2_w = slab[_R_FC2:_R_FC2 + VEC_LEN, :NUM_CLASSES]
    fc2_b = slab[_R_VEC + _VEC_FC2B, :NUM_CLASSES]

    xp = x + pos[None, :]
    q = xp * wq + bq
    k = xp * wk + bk
    attn = jax.nn.softmax(q[:, :, None] * k[:, None, :], axis=-1)   # (B, bands, bands)
    w = attn.mean(axis=(0, 1))                                      # (bands,)
    rng = w.max() - w.min()
    ba = (w - w.min()) / jnp.where(rng > 0, rng, 1.0)
    if epoch < 400:
        ba = ba + 0.1
    else:
        dk = (180 - 50) / (500 - 400) * (epoch - 400)
        kk = max(1, min(int(180 - dk), BANDS))
        thr = jax.lax.top_k(ba, kk)[0][-1]
        ba = jnp.where(ba < thr, 0.0, ba)
    xs = x * ba[None, :]
    h = jnp.sum(xs[:, :, None] * fc1_w[None, :, :], axis=1) + fc1_b
    mu = h.mean(-1, keepdims=True)
    var = ((h - mu) ** 2).mean(-1, keepdims=True)
    hn = (h - mu) * jax.lax.rsqrt(var + LN_EPS) * ln_w + ln_b
    g = hn * 0.5 * (1.0 + jax.lax.erf(hn / math.sqrt(2.0)))
    y = jnp.sum(g[:, :, None] * fc2_w[None, :, :], axis=1) + fc2_b
    return y, ba


if __name__ == "__main__":
    key = jax.random.PRNGKey(0)
    k_x, k_p = jax.random.split(key)

    B = 8
    x = jax.random.normal(k_x, (B, BANDS), jnp.float32)
    params = init_params(k_p)

    # epoch < 400 (offset path) and epoch >= 400 (in-kernel top-k threshold path),
    # both served by the same compiled kernel.
    for epoch in (1, 450):
        y, band_attention = tformer_forward(params, x, epoch)
        jax.block_until_ready((y, band_attention))
        y_ref, ba_ref = tformer_reference(params, x, epoch)

        assert y.shape == (B, NUM_CLASSES)
        assert band_attention.shape == (BANDS,)
        assert bool(jnp.all(jnp.isfinite(y)))
        assert bool(jnp.all(jnp.isfinite(band_attention)))
        assert bool(jnp.allclose(y, y_ref, rtol=1e-3, atol=1e-4)), "y mismatch"
        assert bool(jnp.allclose(band_attention, ba_ref, rtol=1e-3, atol=1e-4)), "band attention mismatch"

    print("KERNEL_OK")
</pallas_src>

<mosaic_0001>
module attributes {stable_mosaic.version = 11 : i64} {
  func.func @kernel(%arg0: memref<4xf32, #tpu.memory_space<smem>>, %arg1: memref<2xi32, #tpu.memory_space<smem>>, %arg2: memref<8x32xf32, #tpu.memory_space<vmem>>, %arg3: memref<168x128xf32, #tpu.memory_space<vmem>>, %arg4: memref<8x128xf32, #tpu.memory_space<vmem>>, %arg5: memref<8x32xf32, #tpu.memory_space<vmem>>) attributes {dimension_semantics = [], scalar_prefetch = 0 : i64, scratch_operands = 0 : i64, tpu.core_type = #tpu.core_type<tc>} {
    %c0 = arith.constant 0 : index
    %0 = memref.load %arg0[%c0] : memref<4xf32, #tpu.memory_space<smem>>
    %c1 = arith.constant 1 : index
    %1 = memref.load %arg0[%c1] : memref<4xf32, #tpu.memory_space<smem>>
    %c2 = arith.constant 2 : index
    %2 = memref.load %arg0[%c2] : memref<4xf32, #tpu.memory_space<smem>>
    %c3 = arith.constant 3 : index
    %3 = memref.load %arg0[%c3] : memref<4xf32, #tpu.memory_space<smem>>
    %c0_0 = arith.constant 0 : index
    %4 = memref.load %arg1[%c0_0] : memref<2xi32, #tpu.memory_space<smem>>
    %c0_i32 = arith.constant 0 : i32
    %5 = arith.cmpi sgt, %4, %c0_i32 : i32
    %6 = arith.extui %5 : i1 to i32
    %7 = arith.sitofp %6 : i32 to f32
    %c1_1 = arith.constant 1 : index
    %8 = memref.load %arg1[%c1_1] : memref<2xi32, #tpu.memory_space<smem>>
    %9 = arith.sitofp %8 : i32 to f32
    %c160 = arith.constant 160 : index
    %c0_2 = arith.constant 0 : index
    %10 = vector.load %arg3[%c160, %c0_2] : memref<168x128xf32, #tpu.memory_space<vmem>>, vector<8x128xf32>
    %11 = vector.extract_strided_slice %10 {offsets = [0, 0], sizes = [1, 32], strides = [1, 1]} : vector<8x128xf32> to vector<1x32xf32>
    %12 = vector.extract_strided_slice %10 {offsets = [1, 0], sizes = [1, 128], strides = [1, 1]} : vector<8x128xf32> to vector<1x128xf32>
    %13 = vector.extract_strided_slice %10 {offsets = [2, 0], sizes = [1, 128], strides = [1, 1]} : vector<8x128xf32> to vector<1x128xf32>
    %14 = vector.extract_strided_slice %10 {offsets = [3, 0], sizes = [1, 128], strides = [1, 1]} : vector<8x128xf32> to vector<1x128xf32>
    %15 = vector.extract_strided_slice %10 {offsets = [4, 0], sizes = [1, 128], strides = [1, 1]} : vector<8x128xf32> to vector<1x128xf32>
    %c0_3 = arith.constant 0 : index
    %c0_4 = arith.constant 0 : index
    %16 = vector.load %arg2[%c0_3, %c0_4] : memref<8x32xf32, #tpu.memory_space<vmem>>, vector<8x32xf32>
    %17 = vector.broadcast %11 : vector<1x32xf32> to vector<8x32xf32>
    %18 = arith.addf %16, %17 : vector<8x32xf32>
    %19 = tpu.transpose %18, [1, 0] : vector<8x32xf32> -> vector<32x8xf32>
    %20 = vector.broadcast %0 : f32 to vector<32x8xf32>
    %21 = arith.mulf %19, %20 : vector<32x8xf32>
    %22 = vector.broadcast %1 : f32 to vector<32x8xf32>
    %23 = arith.addf %21, %22 : vector<32x8xf32>
    %24 = vector.broadcast %2 : f32 to vector<32x8xf32>
    %25 = arith.mulf %19, %24 : vector<32x8xf32>
    %26 = vector.broadcast %3 : f32 to vector<32x8xf32>
    %27 = arith.addf %25, %26 : vector<32x8xf32>
    %28 = tpu.concatenate %27, %27, %27, %27, %27, %27, %27, %27, %27, %27, %27, %27, %27, %27, %27, %27, %27, %27, %27, %27, %27, %27, %27, %27, %27, %27, %27, %27, %27, %27, %27, %27 in 1 : vector<32x8xf32>, vector<32x8xf32>, vector<32x8xf32>, vector<32x8xf32>, vector<32x8xf32>, vector<32x8xf32>, vector<32x8xf32>, vector<32x8xf32>, vector<32x8xf32>, vector<32x8xf32>, vector<32x8xf32>, vector<32x8xf32>, vector<32x8xf32>, vector<32x8xf32>, vector<32x8xf32>, vector<32x8xf32>, vector<32x8xf32>, vector<32x8xf32>, vector<32x8xf32>, vector<32x8xf32>, vector<32x8xf32>, vector<32x8xf32>, vector<32x8xf32>, vector<32x8xf32>, vector<32x8xf32>, vector<32x8xf32>, vector<32x8xf32>, vector<32x8xf32>, vector<32x8xf32>, vector<32x8xf32>, vector<32x8xf32>, vector<32x8xf32> -> vector<32x256xf32>
    %29 = tpu.concatenate %23, %23, %23, %23, %23, %23, %23, %23, %23, %23, %23, %23, %23, %23, %23, %23, %23, %23, %23, %23, %23, %23, %23, %23, %23, %23, %23, %23, %23, %23, %23, %23 in 1 : vector<32x8xf32>, vector<32x8xf32>, vector<32x8xf32>, vector<32x8xf32>, vector<32x8xf32>, vector<32x8xf32>, vector<32x8xf32>, vector<32x8xf32>, vector<32x8xf32>, vector<32x8xf32>, vector<32x8xf32>, vector<32x8xf32>, vector<32x8xf32>, vector<32x8xf32>, vector<32x8xf32>, vector<32x8xf32>, vector<32x8xf32>, vector<32x8xf32>, vector<32x8xf32>, vector<32x8xf32>, vector<32x8xf32>, vector<32x8xf32>, vector<32x8xf32>, vector<32x8xf32>, vector<32x8xf32>, vector<32x8xf32>, vector<32x8xf32>, vector<32x8xf32>, vector<32x8xf32>, vector<32x8xf32>, vector<32x8xf32>, vector<32x8xf32> -> vector<32x256xf32>
    %30 = tpu.iota {dimensions = array<i32: 0>} : vector<32x256xi32>
    %31 = tpu.iota {dimensions = array<i32: 1>} : vector<32x256xi32>
    %c8_i32 = arith.constant 8 : i32
    %32 = vector.broadcast %c8_i32 : i32 to vector<32x256xi32>
    %33 = arith.muli %30, %32 : vector<32x256xi32>
    %34 = arith.cmpi sge, %31, %33 : vector<32x256xi32>
    %c1_i32 = arith.constant 1 : i32
    %35 = vector.broadcast %c1_i32 : i32 to vector<32x256xi32>
    %36 = arith.addi %30, %35 : vector<32x256xi32>
    %c8_i32_5 = arith.constant 8 : i32
    %37 = vector.broadcast %c8_i32_5 : i32 to vector<32x256xi32>
    %38 = arith.muli %36, %37 : vector<32x256xi32>
    %39 = arith.cmpi slt, %31, %38 : vector<32x256xi32>
    %40 = arith.andi %34, %39 : vector<32x256xi1>
    %cst = arith.constant 0.000000e+00 : f32
    %41 = vector.broadcast %cst : f32 to vector<32x256xf32>
    %42 = arith.select %40, %29, %41 : vector<32x256xi1>, vector<32x256xf32>
    %cst_6 = arith.constant dense<0.000000e+00> : vector<256xf32>
    %43 = vector.multi_reduction <add>, %42, %cst_6 [0] : vector<32x256xf32> to vector<256xf32>
    %44 = vector.shape_cast %43 : vector<256xf32> to vector<1x256xf32>
    %45 = vector.broadcast %44 : vector<1x256xf32> to vector<32x256xf32>
    %46 = arith.mulf %28, %45 : vector<32x256xf32>
    %cst_7 = arith.constant dense<0xFF800000> : vector<256xf32>
    %47 = vector.multi_reduction <maximumf>, %46, %cst_7 [0] : vector<32x256xf32> to vector<256xf32>
    %48 = vector.shape_cast %47 : vector<256xf32> to vector<1x256xf32>
    %49 = vector.broadcast %48 : vector<1x256xf32> to vector<32x256xf32>
    %50 = arith.subf %46, %49 : vector<32x256xf32>
    %51 = math.exp %50 : vector<32x256xf32>
    %cst_8 = arith.constant dense<0.000000e+00> : vector<256xf32>
    %52 = vector.multi_reduction <add>, %51, %cst_8 [0] : vector<32x256xf32> to vector<256xf32>
    %53 = vector.shape_cast %52 : vector<256xf32> to vector<1x256xf32>
    %54 = vector.broadcast %53 : vector<1x256xf32> to vector<32x256xf32>
    %55 = arith.divf %51, %54 : vector<32x256xf32>
    %cst_9 = arith.constant dense<0.000000e+00> : vector<32xf32>
    %56 = vector.multi_reduction <add>, %55, %cst_9 [1] : vector<32x256xf32> to vector<32xf32>
    %57 = vector.shape_cast %56 : vector<32xf32> to vector<32x1xf32>
    %cst_10 = arith.constant 3.906250e-03 : f32
    %58 = vector.broadcast %cst_10 : f32 to vector<32x1xf32>
    %59 = arith.mulf %57, %58 : vector<32x1xf32>
    %60 = tpu.iota {dimensions = array<i32: 0>} : vector<32x32xi32>
    %61 = tpu.iota {dimensions = array<i32: 1>} : vector<32x32xi32>
    %62 = arith.cmpi eq, %60, %61 : vector<32x32xi32>
    %cst_11 = arith.constant 0.000000e+00 : f32
    %63 = vector.shape_cast %59 : vector<32x1xf32> to vector<32x1xf32>
    %64 = vector.broadcast %63 : vector<32x1xf32> to vector<32x32xf32>
    %65 = vector.broadcast %cst_11 : f32 to vector<32x32xf32>
    %66 = arith.select %62, %64, %65 : vector<32x32xi1>, vector<32x32xf32>
    %cst_12 = arith.constant dense<0.000000e+00> : vector<32xf32>
    %67 = vector.multi_reduction <add>, %66, %cst_12 [0] : vector<32x32xf32> to vector<32xf32>
    %68 = vector.shape_cast %67 : vector<32xf32> to vector<1x32xf32>
    %cst_13 = arith.constant dense<0x7F800000> : vector<1xf32>
    %69 = vector.multi_reduction <minimumf>, %68, %cst_13 [1] : vector<1x32xf32> to vector<1xf32>
    %70 = vector.shape_cast %69 : vector<1xf32> to vector<1x1xf32>
    %cst_14 = arith.constant dense<0xFF800000> : vector<1xf32>
    %71 = vector.multi_reduction <maximumf>, %68, %cst_14 [1] : vector<1x32xf32> to vector<1xf32>
    %72 = vector.shape_cast %71 : vector<1xf32> to vector<1x1xf32>
    %73 = arith.subf %72, %70 : vector<1x1xf32>
    %cst_15 = arith.constant 0.000000e+00 : f32
    %74 = vector.broadcast %cst_15 : f32 to vector<1x1xf32>
    %75 = arith.cmpf ogt, %73, %74 : vector<1x1xf32>
    %cst_16 = arith.constant 1.000000e+00 : f32
    %76 = vector.broadcast %cst_16 : f32 to vector<1x1xf32>
    %77 = arith.select %75, %73, %76 : vector<1x1xi1>, vector<1x1xf32>
    %78 = vector.broadcast %70 : vector<1x1xf32> to vector<1x32xf32>
    %79 = arith.subf %68, %78 : vector<1x32xf32>
    %80 = vector.broadcast %77 : vector<1x1xf32> to vector<1x32xf32>
    %81 = arith.divf %79, %80 : vector<1x32xf32>
    %82 = vector.broadcast %59 : vector<32x1xf32> to vector<32x32xf32>
    %83 = vector.broadcast %68 : vector<1x32xf32> to vector<32x32xf32>
    %84 = arith.cmpf ogt, %82, %83 : vector<32x32xf32>
    %85 = arith.extui %84 : vector<32x32xi1> to vector<32x32xi32>
    %86 = arith.sitofp %85 : vector<32x32xi32> to vector<32x32xf32>
    %cst_17 = arith.constant dense<0.000000e+00> : vector<32xf32>
    %87 = vector.multi_reduction <add>, %86, %cst_17 [0] : vector<32x32xf32> to vector<32xf32>
    %88 = vector.shape_cast %87 : vector<32xf32> to vector<1x32xf32>
    %89 = vector.broadcast %9 : f32 to vector<1x32xf32>
    %90 = arith.cmpf olt, %88, %89 : vector<1x32xf32>
    %cst_18 = arith.constant 1.000000e+30 : f32
    %91 = vector.broadcast %cst_18 : f32 to vector<1x32xf32>
    %92 = arith.select %90, %81, %91 : vector<1x32xi1>, vector<1x32xf32>
    %cst_19 = arith.constant dense<0x7F800000> : vector<1xf32>
    %93 = vector.multi_reduction <minimumf>, %92, %cst_19 [1] : vector<1x32xf32> to vector<1xf32>
    %94 = vector.shape_cast %93 : vector<1xf32> to vector<1x1xf32>
    %95 = vector.broadcast %94 : vector<1x1xf32> to vector<1x32xf32>
    %96 = arith.cmpf olt, %81, %95 : vector<1x32xf32>
    %cst_20 = arith.constant 0.000000e+00 : f32
    %97 = vector.broadcast %cst_20 : f32 to vector<1x32xf32>
    %98 = arith.select %96, %97, %81 : vector<1x32xi1>, vector<1x32xf32>
    %99 = vector.broadcast %7 : f32 to vector<1x32xf32>
    %100 = arith.mulf %99, %98 : vector<1x32xf32>
    %cst_21 = arith.constant 1.000000e+00 : f32
    %101 = arith.subf %cst_21, %7 : f32
    %cst_22 = arith.constant 1.000000e-01 : f32
    %102 = vector.broadcast %cst_22 : f32 to vector<1x32xf32>
    %103 = arith.addf %81, %102 : vector<1x32xf32>
    %104 = vector.broadcast %101 : f32 to vector<1x32xf32>
    %105 = arith.mulf %104, %103 : vector<1x32xf32>
    %106 = arith.addf %100, %105 : vector<1x32xf32>
    %107 = vector.broadcast %106 : vector<1x32xf32> to vector<8x32xf32>
    %108 = arith.mulf %16, %107 : vector<8x32xf32>
    %c0_23 = arith.constant 0 : index
    %c0_24 = arith.constant 0 : index
    %109 = vector.load %arg3[%c0_23, %c0_24] : memref<168x128xf32, #tpu.memory_space<vmem>>, vector<32x128xf32>
    %cst_25 = arith.constant dense<0.000000e+00> : vector<8x128xf32>
    %110 = tpu.matmul %108, %109, %cst_25 {dimension_numbers = #tpu.dot_dimension_numbers<[1], [0], [0], [1], [0, 0, 1, 1], [], []>, precision = #tpu.contract_precision<fp32>} : vector<8x32xf32>, vector<32x128xf32>, vector<8x128xf32> -> vector<8x128xf32>
    %111 = vector.broadcast %12 : vector<1x128xf32> to vector<8x128xf32>
    %112 = arith.addf %110, %111 : vector<8x128xf32>
    %113 = tpu.iota {dimensions = array<i32: 1>} : vector<8x128xi32>
    %cst_26 = arith.constant dense<0.000000e+00> : vector<8xf32>
    %114 = vector.multi_reduction <add>, %112, %cst_26 [1] : vector<8x128xf32> to vector<8xf32>
    %115 = vector.shape_cast %114 : vector<8xf32> to vector<8x1xf32>
    %cst_27 = arith.constant 6.250000e-02 : f32
    %116 = vector.broadcast %cst_27 : f32 to vector<8x1xf32>
    %117 = arith.mulf %115, %116 : vector<8x1xf32>
    %c16_i32 = arith.constant 16 : i32
    %118 = vector.broadcast %c16_i32 : i32 to vector<8x128xi32>
    %119 = arith.cmpi slt, %113, %118 : vector<8x128xi32>
    %120 = vector.broadcast %117 : vector<8x1xf32> to vector<8x128xf32>
    %121 = arith.subf %112, %120 : vector<8x128xf32>
    %cst_28 = arith.constant 0.000000e+00 : f32
    %122 = vector.broadcast %cst_28 : f32 to vector<8x128xf32>
    %123 = arith.select %119, %121, %122 : vector<8x128xi1>, vector<8x128xf32>
    %124 = arith.mulf %123, %123 : vector<8x128xf32>
    %cst_29 = arith.constant dense<0.000000e+00> : vector<8xf32>
    %125 = vector.multi_reduction <add>, %124, %cst_29 [1] : vector<8x128xf32> to vector<8xf32>
    %126 = vector.shape_cast %125 : vector<8xf32> to vector<8x1xf32>
    %cst_30 = arith.constant 6.250000e-02 : f32
    %127 = vector.broadcast %cst_30 : f32 to vector<8x1xf32>
    %128 = arith.mulf %126, %127 : vector<8x1xf32>
    %cst_31 = arith.constant 9.99999974E-6 : f32
    %129 = vector.broadcast %cst_31 : f32 to vector<8x1xf32>
    %130 = arith.addf %128, %129 : vector<8x1xf32>
    %131 = math.rsqrt %130 : vector<8x1xf32>
    %132 = vector.broadcast %131 : vector<8x1xf32> to vector<8x128xf32>
    %133 = arith.mulf %123, %132 : vector<8x128xf32>
    %134 = vector.broadcast %13 : vector<1x128xf32> to vector<8x128xf32>
    %135 = arith.mulf %133, %134 : vector<8x128xf32>
    %136 = vector.broadcast %14 : vector<1x128xf32> to vector<8x128xf32>
    %137 = arith.addf %135, %136 : vector<8x128xf32>
    %cst_32 = arith.constant 5.000000e-01 : f32
    %138 = vector.broadcast %cst_32 : f32 to vector<8x128xf32>
    %139 = arith.mulf %137, %138 : vector<8x128xf32>
    %cst_33 = arith.constant 0.707106769 : f32
    %140 = vector.broadcast %cst_33 : f32 to vector<8x128xf32>
    %141 = arith.mulf %137, %140 : vector<8x128xf32>
    %142 = math.erf %141 : vector<8x128xf32>
    %cst_34 = arith.constant 1.000000e+00 : f32
    %143 = vector.broadcast %cst_34 : f32 to vector<8x128xf32>
    %144 = arith.addf %143, %142 : vector<8x128xf32>
    %145 = arith.mulf %139, %144 : vector<8x128xf32>
    %c32 = arith.constant 32 : index
    %c0_35 = arith.constant 0 : index
    %146 = vector.load %arg3[%c32, %c0_35] : memref<168x128xf32, #tpu.memory_space<vmem>>, vector<128x128xf32>
    %cst_36 = arith.constant dense<0.000000e+00> : vector<8x128xf32>
    %147 = tpu.matmul %145, %146, %cst_36 {dimension_numbers = #tpu.dot_dimension_numbers<[1], [0], [0], [1], [0, 0, 1, 1], [], []>, precision = #tpu.contract_precision<fp32>} : vector<8x128xf32>, vector<128x128xf32>, vector<8x128xf32> -> vector<8x128xf32>
    %148 = vector.broadcast %15 : vector<1x128xf32> to vector<8x128xf32>
    %149 = arith.addf %147, %148 : vector<8x128xf32>
    %c0_37 = arith.constant 0 : index
    %c0_38 = arith.constant 0 : index
    %150 = vector.load %arg4[%c0_37, %c0_38] : memref<8x128xf32, #tpu.memory_space<vmem>>, vector<8x128xf32>
    tpu.vector_store %arg4[%c0_37, %c0_38], %149 {strides = array<i32>} : memref<8x128xf32, #tpu.memory_space<vmem>>, vector<8x128xf32>,
    %151 = vector.shape_cast %106 : vector<1x32xf32> to vector<1x32xf32>
    %152 = vector.broadcast %151 : vector<1x32xf32> to vector<8x32xf32>
    %c0_39 = arith.constant 0 : index
    %c0_40 = arith.constant 0 : index
    %153 = vector.load %arg5[%c0_39, %c0_40] : memref<8x32xf32, #tpu.memory_space<vmem>>, vector<8x32xf32>
    tpu.vector_store %arg5[%c0_39, %c0_40], %152 {strides = array<i32>} : memref<8x32xf32, #tpu.memory_space<vmem>>, vector<8x32xf32>,
    return
  }
}

</mosaic_0001>

<bundles_post_ra>
// kernel: tpu_custom_call.1
= control target key start
LH: loop header
LB: loop body
LE: loop exit
PB: predicated region body
PF: predicated region fallthrough
CT: control target
= control target key end

     0   :  { %11 = vsyncpa [#allocation5], 0  ;;  %s3942_s0 = inlined_call_operand.hbm [shape: f32[4], index: 0, kind: input, shape index: {}]   ;;  %s3943_s1 = inlined_call_operand.vmem [shape: s32[2], index: 1, kind: input, shape index: {}]   ;;  %s3944_s2 = inlined_call_operand.hbm [shape: f32[8,32], index: 2, kind: input, shape index: {}]   ;;  %s3945_s3 = inlined_call_operand.hbm [shape: f32[168,128], index: 3, kind: input, shape index: {}]   ;;  %s3946_s4 = inlined_call_operand.hbm [shape: f32[8,128], index: 4, kind: output, shape index: {0}]   ;;  %s3947_s5 = inlined_call_operand.hbm [shape: f32[8,32], index: 5, kind: output, shape index: {1}]  }
   0x1   :  { %12 = vsyncpa [#allocation6], 0 }
   0x2   :  { %13 = vsyncpa [#allocation3], 0 }
   0x3   :  { %14 = vsyncpa [#allocation10], 0 }
   0x4   :  { %15 = vsyncpa [#allocation4], 0 }
   0x5   :  { %16 = vsyncpa [#allocation13], 0  ;;  %s31_s20 = sshll.u32 %s3943_s1, 4  ;;  %s2769_s23 = scalar_lea.hbm %s3942_s0, 16  ;;  %s32_s20 = int_to_ptr.vmem [resolvable:$true] %s31_s20 }
   0x6   :  { %p2770_p0 = scmp.ne.s32.totalorder %s3942_s0, %s2769_s23  ;;  %p2773_p1 = scmp.lt.u32.totalorder %s2769_s23, %s3942_s0 }
   0x8   :  { %p2775_p2 = pnand %p2773_p1, %p2770_p0 }
   0xa   :  { %2778 = shalt.err (!%p2775_p2)
}
   0xb   :  { %s2891_s28 = smov [#allocation2]   ;;  %s2779_s1 = scalar_lea.vmem %s32_s20, 16 }
   0xc   :  { %24 = dma.hbm_to_smem %s3942_s0, 16, %s2891_s28, [#allocation5]  }
   0xd   :  { %p2780_p3 = scmp.ne.s32.totalorder %s32_s20, %s2779_s1  ;;  %p2784_p4 = scmp.lt.s32.totalorder %s32_s20, %s32_s20 }
   0xe   :  { %p2785_p5 = scmp.lt.s32.totalorder %s2779_s1, %s2779_s1 }
  0x10   :  { %p2786_p6 = por %p2785_p5, %p2784_p4 }
  0x12   :  { %p2787_p7 = pnand %p2786_p6, %p2780_p3 }
  0x14   :  { %2790 = shalt.err (!%p2787_p7)
}
  0x15   :  { %s2892_s6 = smov [#allocation7]   ;;  %s2893_s7 = smov [#allocation8]  }
  0x16   :  { %34 = dma.vmem_to_smem %s32_s20, 16, %s2892_s6, [#allocation6]  }
  0x17   :  { %s41_s8 = sshll.u32 %s2893_s7, 4  ;;  %s2894_s9 = smov [#allocation9]   ;;  %s42_s8 = int_to_ptr.vmem [resolvable:$true] %s41_s8 }
  0x18   :  { %s50_s10 = sshll.u32 %s2894_s9, 4  ;;  %s2791_s0 = scalar_lea.hbm %s3944_s2, 128  ;;  %s2961_s10 = int_to_ptr.vmem [resolvable:$true] %s50_s10 }
  0x19   :  { %p2792_p8 = scmp.ne.s32.totalorder %s3944_s2, %s2791_s0  ;;  %p2795_p9 = scmp.lt.u32.totalorder %s2791_s0, %s3944_s2 }
  0x1b   :  { %p2797_p10 = pnand %p2795_p9, %p2792_p8 }
  0x1d   :  { %2800 = shalt.err (!%p2797_p10)
}
  0x1e   :  { %s2801_s17 = scalar_lea.vmem %s42_s8, 128  ;;  %p2806_p12 = scmp.lt.s32.totalorder %s42_s8, %s42_s8 }
  0x1f   :  { %p2802_p11 = scmp.ne.s32.totalorder %s42_s8, %s2801_s17  ;;  %p2807_p13 = scmp.lt.s32.totalorder %s2801_s17, %s2801_s17 }
  0x21   :  { %p2808_p0 = por %p2807_p13, %p2806_p12 }
  0x23   :  { %p2809_p1 = pnand %p2808_p0, %p2802_p11 }
  0x25   :  { %2812 = shalt.err (!%p2809_p1)
}
  0x26   :  { %44 = dma.hbm_to_vmem [thread:$0]  %s3944_s2, 128, %s42_s8, [#allocation3]  }
  0x27   :  { %s2813_s22 = scalar_lea.hbm %s3945_s3, 2688 }
  0x28   :  { %p2814_p2 = scmp.ne.s32.totalorder %s3945_s3, %s2813_s22  ;;  %p2817_p3 = scmp.lt.u32.totalorder %s2813_s22, %s3945_s3 }
  0x2a   :  { %p2819_p4 = pnand %p2817_p3, %p2814_p2 }
  0x2c   :  { %2822 = shalt.err (!%p2819_p4)
}
  0x2d   :  { %s2823_s27 = scalar_lea.vmem %s2961_s10, 2688  ;;  %p2828_p6 = scmp.lt.s32.totalorder %s2961_s10, %s2961_s10 }
  0x2e   :  { %p2824_p5 = scmp.ne.s32.totalorder %s2961_s10, %s2823_s27  ;;  %p2829_p7 = scmp.lt.s32.totalorder %s2823_s27, %s2823_s27 }
  0x30   :  { %p2830_p8 = por %p2829_p7, %p2828_p6 }
  0x32   :  { %p2831_p9 = pnand %p2830_p8, %p2824_p5 }
  0x34   :  { %2834 = shalt.err (!%p2831_p9)
}
  0x35   :  { %s2895_s2 = smov 128   ;;  %s2896_s28 = smov 8  }
  0x36   :  { %56 = dma.hbm_to_vmem [thread:$0]  %s3945_s3, 2688, %s2961_s10, [#allocation10], %s2895_s2, %s2895_s2, %s2896_s28  }
  0x37   :  { %2879 = dma.done.wait [#allocation5], 16  }
  0x38   :  { %2880 = vsyncadd [#allocation5], 4294967280 }
  0x39   :  { %2881 = dma.done.wait [#allocation6], 16  }
  0x3a   :  { %2882 = vsyncadd [#allocation6], 4294967280 }
  0x3b   :  { %2883 = dma.done.wait [#allocation3], 128  }
  0x3c   :  { %2884 = vsyncadd [#allocation3], 4294967168 }
  0x3d   :  { %2885 = dma.done.wait [#allocation10], 2688  }
  0x3e   :  { %2886 = vsyncadd [#allocation10], 4294964608 }
  0x3f   :  { %69 = sfence }
  0x40   :  { %v82_v0 = vlaneseq  ;;  %v80_v2 = vld [vmem:[#allocation9 + $0xa0] sm:$0xff]  ;;  %v81_v4 = vld [vmem:[#allocation8] sm:$0xff]  ;;  %s70_s3 = sld [smem:[#allocation2]]  ;;  %s2099_s1 = sld [smem:[#allocation2 + $0x1]]  ;;  %vm3957_vm0 = vcmask 64512   ;;  %vm3956_vm1 = vcmask 130048  }
  0x41   :  { %s2897_s6 = smov 16   ;;  %s2898_s7 = smov 24   ;;  %vm3955_vm2 = vcmask 195584   ;;  %vm3954_vm3 = vcmask 261120   ;;  %vm343_vm4 = vcmask 326656   ;;  %vm348_vm5 = vcmask 392192  }
  0x42   :  { %v2994_v1 = vshrl.u32 %v82_v0, 7  ;;  %s2899_s8 = smov 48   ;;  %s2900_s9 = smov 32   ;;  %vm3953_vm6 = vcmask 457728   ;;  %vm3952_vm7 = vcmask 523264   ;;  %vm3951_vm8 = vcmask 588800  }
  0x43   :  { %s2901_s10 = smov 56   ;;  %s2902_s11 = smov 40   ;;  %vm3950_vm9 = vcmask 654336   ;;  %vm3949_vm10 = vcmask 719872   ;;  %vm3948_vm11 = vcmask 785408   ;;  %vm3959_vm12 = vcmask 850944  }
  0x44   :  { %v84_v3 = vsub.s32 0, %v2994_v1  ;;  %s2903_s12 = smov 64   ;;  %s2904_s0 = smov 72   ;;  %vm3958_vm13 = vcmask 916480   ;;  %vm393_vm14 = vcmask 982016  }
  0x45   :  { %s2905_s13 = smov 80   ;;  %s2906_s14 = smov 88  }
  0x46   :  { %v85_v5 = vrot.slane %v80_v2, %v84_v3  ;;  %v119_v7 = vstv %s70_s3  ;;  %v124_v9 = vstv %s2099_s1  ;;  %s2907_s15 = smov 96   ;;  %s2908_s16 = smov 104  }
  0x47   :  { %s2909_s17 = smov 112   ;;  %s2100_s18 = sld [smem:[#allocation2 + $0x2]] }
  0x48   :  { %v86_v6 = vadd.f32 %v85_v5, %v81_v4  ;;  %s2910_s19 = smov 120   ;;  %s2101_s20 = sld [smem:[#allocation2 + $0x3]] }
  0x49   :  { %s2102_s21 = sld [smem:[#allocation7 + $0x1]]  ;;  %s74_s23 = sld [smem:[#allocation7]] }
  0x4a   :  { %87 = vxpose.xlu0.b32.start.end [1/1] (short) (narrow) %v86_v6, 32  ;;  %s2914_s27 = smov [#allocation12]  }
  0x4b   :  { %s2083_s2 = sshll.u32 %s2914_s27, 4  ;;  %s2084_s2 = int_to_ptr.vmem [resolvable:$true] %s2083_s2 }
  0x4c   :  { %p2840_p12 = scmp.lt.s32.totalorder %s2084_s2, %s2084_s2 }
  0x4d   :  { %v129_v21 = vstv %s2100_s18 }
  0x4e   :  { %v3106_v23 = vstv %s2101_s20 }
  0x4f   :  { %s79_s22 = scvt.s32.f32 %s2102_s21  ;;  %p75_p10 = scmp.gt.s32.totalorder %s74_s23, 0 }
  0x51   :  { %s76_s24 = scalar_select %p75_p10, 1, 0 }
  0x53   :  { %s77_s25 = scvt.s32.f32 %s76_s24 }
  0x55   :  { %s874_s26 = ssub.f32 1.0, %s77_s25 }
  0xca   :  { %v2997_v8 = vpop.trf.xlu0 }
  0xcb   :  { %v120_v10 = vmul.f32 %v119_v7, %v2997_v8  ;;  %v130_v22 = vmul.f32 %v129_v21, %v2997_v8 }
  0xcd   :  { %v3000_v11 = vadd.f32 %v124_v9, %v120_v10  ;;  %v3113_v24 = vadd.f32 %v3106_v23, %v130_v22 }
  0xce   :  { %v3006_v12 = vpop.trf.xlu0 }
  0xcf   :  { %414 = vrot.lane.b32.xlu1 %v3000_v11, %s2897_s6  ;;  %402 = vrot.lane.b32.xlu0 %v3000_v11, %s2896_s28  ;;  %v121_v14 = vmul.f32 %v119_v7, %v3006_v12  ;;  %v131_v41 = vmul.f32 %v129_v21, %v3006_v12 }
  0xd1   :  { %v3019_v15 = vadd.f32 %v124_v9, %v121_v14  ;;  %v3189_v44 = vadd.f32 %v3106_v23, %v131_v41 }
  0xd2   :  { %v3012_v13 = vpop.trf.xlu0 }
  0xd3   :  { %426 = vrot.lane.b32.xlu1 %v3000_v11, %s2898_s7  ;;  %462 = vrot.lane.b32.xlu0 %v3000_v11, %s2899_s8  ;;  %v122_v19 = vmul.f32 %v119_v7, %v3012_v13  ;;  %v132_v25 = vmul.f32 %v129_v21, %v3012_v13 }
  0xd5   :  { %v3067_v20 = vadd.f32 %v124_v9, %v122_v19  ;;  %v3121_v26 = vadd.f32 %v3106_v23, %v132_v25 }
  0xd6   :  { %v3025_v16 = vpop.trf.xlu0 }
  0xd7   :  { %438 = vrot.lane.b32.xlu1 %v3000_v11, %s2900_s9  ;;  %474 = vrot.lane.b32.xlu0 %v3000_v11, %s2901_s10  ;;  %v123_v17 = vmul.f32 %v119_v7, %v3025_v16  ;;  %v133_v45 = vmul.f32 %v129_v21, %v3025_v16 }
  0xd9   :  { %v3032_v18 = vadd.f32 %v124_v9, %v123_v17  ;;  %v3204_v50 = vadd.f32 %v3106_v23, %v133_v45 }
  0xdb   :  { %450 = vrot.lane.b32.xlu1 %v3000_v11, %s2902_s11  ;;  %486 = vrot.lane.b32.xlu0 %v3000_v11, %s2903_s12 }
  0xdf   :  { %404 = vrot.lane.b32.xlu1 %v3019_v15, %s2896_s28  ;;  %498 = vrot.lane.b32.xlu0 %v3000_v11, %s2904_s0 }
  0xe3   :  { %416 = vrot.lane.b32.xlu1 %v3019_v15, %s2897_s6  ;;  %510 = vrot.lane.b32.xlu0 %v3000_v11, %s2905_s13 }
  0xe7   :  { %428 = vrot.lane.b32.xlu1 %v3019_v15, %s2898_s7  ;;  %432 = vrot.lane.b32.xlu0 %v3032_v18, %s2898_s7 }
  0xeb   :  { %440 = vrot.lane.b32.xlu1 %v3019_v15, %s2900_s9  ;;  %444 = vrot.lane.b32.xlu0 %v3032_v18, %s2900_s9 }
  0xef   :  { %452 = vrot.lane.b32.xlu1 %v3019_v15, %s2902_s11  ;;  %456 = vrot.lane.b32.xlu0 %v3032_v18, %s2902_s11 }
  0xf3   :  { %464 = vrot.lane.b32.xlu1 %v3019_v15, %s2899_s8  ;;  %468 = vrot.lane.b32.xlu0 %v3032_v18, %s2899_s8 }
  0xf7   :  { %476 = vrot.lane.b32.xlu1 %v3019_v15, %s2901_s10  ;;  %480 = vrot.lane.b32.xlu0 %v3032_v18, %s2901_s10 }
  0xfb   :  { %488 = vrot.lane.b32.xlu1 %v3019_v15, %s2903_s12  ;;  %522 = vrot.lane.b32.xlu0 %v3000_v11, %s2906_s14 }
  0xff   :  { %500 = vrot.lane.b32.xlu1 %v3019_v15, %s2904_s0  ;;  %492 = vrot.lane.b32.xlu0 %v3032_v18, %s2903_s12 }
 0x103   :  { %512 = vrot.lane.b32.xlu1 %v3019_v15, %s2905_s13  ;;  %534 = vrot.lane.b32.xlu0 %v3000_v11, %s2907_s15 }
 0x107   :  { %406 = vrot.lane.b32.xlu1 %v3067_v20, %s2896_s28  ;;  %504 = vrot.lane.b32.xlu0 %v3032_v18, %s2904_s0 }
 0x10b   :  { %418 = vrot.lane.b32.xlu1 %v3067_v20, %s2897_s6  ;;  %546 = vrot.lane.b32.xlu0 %v3000_v11, %s2908_s16 }
 0x10f   :  { %430 = vrot.lane.b32.xlu1 %v3067_v20, %s2898_s7  ;;  %516 = vrot.lane.b32.xlu0 %v3032_v18, %s2905_s13 }
 0x113   :  { %442 = vrot.lane.b32.xlu1 %v3067_v20, %s2900_s9  ;;  %558 = vrot.lane.b32.xlu0 %v3000_v11, %s2909_s17 }
 0x117   :  { %454 = vrot.lane.b32.xlu1 %v3067_v20, %s2902_s11  ;;  %528 = vrot.lane.b32.xlu0 %v3032_v18, %s2906_s14 }
 0x11b   :  { %466 = vrot.lane.b32.xlu1 %v3067_v20, %s2899_s8  ;;  %570 = vrot.lane.b32.xlu0 %v3000_v11, %s2910_s19 }
 0x11f   :  { %478 = vrot.lane.b32.xlu1 %v3067_v20, %s2901_s10  ;;  %540 = vrot.lane.b32.xlu0 %v3032_v18, %s2907_s15 }
 0x123   :  { %490 = vrot.lane.b32.xlu1 %v3067_v20, %s2903_s12  ;;  %552 = vrot.lane.b32.xlu0 %v3032_v18, %s2908_s16 }
 0x127   :  { %408 = vrot.lane.b32.xlu1 %v3032_v18, %s2896_s28  ;;  %564 = vrot.lane.b32.xlu0 %v3032_v18, %s2909_s17 }
 0x12b   :  { %420 = vrot.lane.b32.xlu1 %v3032_v18, %s2897_s6  ;;  %143 = vrot.lane.b32.xlu0 %v3113_v24, %s2896_s28 }
 0x12f   :  { %502 = vrot.lane.b32.xlu1 %v3067_v20, %s2904_s0  ;;  %147 = vrot.lane.b32.xlu0 %v3121_v26, %s2896_s28 }
 0x133   :  { %524 = vrot.lane.b32.xlu1 %v3019_v15, %s2906_s14  ;;  %155 = vrot.lane.b32.xlu0 %v3113_v24, %s2897_s6 }
 0x137   :  { %514 = vrot.lane.b32.xlu1 %v3067_v20, %s2905_s13  ;;  %159 = vrot.lane.b32.xlu0 %v3121_v26, %s2897_s6 }
 0x13b   :  { %536 = vrot.lane.b32.xlu1 %v3019_v15, %s2907_s15  ;;  %167 = vrot.lane.b32.xlu0 %v3113_v24, %s2898_s7 }
 0x13f   :  { %526 = vrot.lane.b32.xlu1 %v3067_v20, %s2906_s14  ;;  %171 = vrot.lane.b32.xlu0 %v3121_v26, %s2898_s7 }
 0x141   :  { %v415_v27 = vpop.permute.xlu1 %414  ;;  %v403_v28 = vpop.permute.xlu0 %402 }
 0x142   :  { %v582_v46 = vsel %vm3957_vm0, %v3000_v11, %v403_v28 }
 0x143   :  { %548 = vrot.lane.b32.xlu1 %v3019_v15, %s2908_s16  ;;  %179 = vrot.lane.b32.xlu0 %v3113_v24, %s2900_s9  ;;  %v586_v49 = vsel %vm3956_vm1, %v582_v46, %v415_v27 }
 0x145   :  { %v427_v29 = vpop.permute.xlu1 %426  ;;  %v463_v30 = vpop.permute.xlu0 %462 }
 0x146   :  { %v590_v51 = vsel %vm3955_vm2, %v586_v49, %v427_v29 }
 0x147   :  { %538 = vrot.lane.b32.xlu1 %v3067_v20, %s2907_s15  ;;  %183 = vrot.lane.b32.xlu0 %v3121_v26, %s2900_s9 }
 0x149   :  { %v439_v31 = vpop.permute.xlu1 %438  ;;  %v475_v32 = vpop.permute.xlu0 %474 }
 0x14a   :  { %v594_v54 = vsel %vm3954_vm3, %v590_v51, %v439_v31 }
 0x14b   :  { %560 = vrot.lane.b32.xlu1 %v3019_v15, %s2909_s17  ;;  %191 = vrot.lane.b32.xlu0 %v3113_v24, %s2902_s11 }
 0x14d   :  { %v451_v33 = vpop.permute.xlu1 %450  ;;  %v487_v34 = vpop.permute.xlu0 %486 }
 0x14e   :  { %v598_v55 = vsel %vm343_vm4, %v594_v54, %v451_v33 }
 0x14f   :  { %550 = vrot.lane.b32.xlu1 %v3067_v20, %s2908_s16  ;;  %195 = vrot.lane.b32.xlu0 %v3121_v26, %s2902_s11  ;;  %v602_v58 = vsel %vm348_vm5, %v598_v55, %v463_v30 }
 0x150   :  { %v606_v59 = vsel %vm3953_vm6, %v602_v58, %v475_v32 }
 0x151   :  { %v3159_v35 = vpop.permute.xlu1 %404  ;;  %v499_v36 = vpop.permute.xlu0 %498  ;;  %v610_v62 = vsel %vm3952_vm7, %v606_v59, %v487_v34 }
 0x152   :  { %v614_v3 = vsel %vm3951_vm8, %v610_v62, %v499_v36 }
 0x153   :  { %572 = vrot.lane.b32.xlu1 %v3019_v15, %s2910_s19  ;;  %203 = vrot.lane.b32.xlu0 %v3113_v24, %s2899_s8 }
 0x155   :  { %v3165_v37 = vpop.permute.xlu1 %416  ;;  %v511_v38 = vpop.permute.xlu0 %510 }
 0x156   :  { %v618_v4 = vsel %vm3950_vm9, %v614_v3, %v511_v38 }
 0x157   :  { %562 = vrot.lane.b32.xlu1 %v3067_v20, %s2909_s17  ;;  %207 = vrot.lane.b32.xlu0 %v3121_v26, %s2899_s8 }
 0x159   :  { %v3171_v39 = vpop.permute.xlu1 %428  ;;  %v3173_v40 = vpop.permute.xlu0 %432 }
 0x15b   :  { %574 = vrot.lane.b32.xlu1 %v3067_v20, %s2910_s19  ;;  %215 = vrot.lane.b32.xlu0 %v3113_v24, %s2901_s10 }
 0x15d   :  { %v3180_v42 = vpop.permute.xlu1 %440  ;;  %v3182_v43 = vpop.permute.xlu0 %444 }
 0x15f   :  { %576 = vrot.lane.b32.xlu1 %v3032_v18, %s2910_s19  ;;  %219 = vrot.lane.b32.xlu0 %v3121_v26, %s2901_s10 }
 0x161   :  { %v3194_v47 = vpop.permute.xlu1 %452  ;;  %v3196_v48 = vpop.permute.xlu0 %456 }
 0x163   :  { %145 = vrot.lane.b32.xlu1 %v3189_v44, %s2896_s28  ;;  %227 = vrot.lane.b32.xlu0 %v3113_v24, %s2903_s12 }
 0x165   :  { %v3207_v52 = vpop.permute.xlu1 %464  ;;  %v3209_v53 = vpop.permute.xlu0 %468 }
 0x167   :  { %149 = vrot.lane.b32.xlu1 %v3204_v50, %s2896_s28  ;;  %231 = vrot.lane.b32.xlu0 %v3121_v26, %s2903_s12  ;;  %s2835_s28 = scalar_lea.vmem %s2084_s2, 128 }
 0x168   :  { %p2836_p11 = scmp.ne.s32.totalorder %s2084_s2, %s2835_s28  ;;  %p2841_p13 = scmp.lt.s32.totalorder %s2835_s28, %s2835_s28 }
 0x169   :  { %v3217_v56 = vpop.permute.xlu1 %476  ;;  %v3219_v57 = vpop.permute.xlu0 %480 }
 0x16a   :  { %p2842_p0 = por %p2841_p13, %p2840_p12 }
 0x16b   :  { %157 = vrot.lane.b32.xlu1 %v3189_v44, %s2897_s6  ;;  %239 = vrot.lane.b32.xlu0 %v3113_v24, %s2904_s0 }
 0x16c   :  { %p2843_p1 = pnand %p2842_p0, %p2836_p11 }
 0x16d   :  { %v3227_v60 = vpop.permute.xlu1 %488  ;;  %v523_v61 = vpop.permute.xlu0 %522 }
 0x16e   :  { %v622_v5 = vsel %vm3949_vm10, %v618_v4, %v523_v61 }
 0x16f   :  { %161 = vrot.lane.b32.xlu1 %v3204_v50, %s2897_s6  ;;  %243 = vrot.lane.b32.xlu0 %v3121_v26, %s2904_s0 }
 0x171   :  { %v3234_v63 = vpop.permute.xlu1 %500  ;;  %v3236_v2 = vpop.permute.xlu0 %492 }
 0x173   :  { %169 = vrot.lane.b32.xlu1 %v3189_v44, %s2898_s7  ;;  %251 = vrot.lane.b32.xlu0 %v3113_v24, %s2905_s13 }
 0x175   :  { %v3245_v6 = vpop.permute.xlu1 %512  ;;  %v535_v7 = vpop.permute.xlu0 %534 }
 0x176   :  { %v626_v8 = vsel %vm3948_vm11, %v622_v5, %v535_v7  ;;  %v583_v7 = vsel %vm3957_vm0, %v3019_v15, %v3159_v35 }
 0x177   :  { %173 = vrot.lane.b32.xlu1 %v3204_v50, %s2898_s7  ;;  %255 = vrot.lane.b32.xlu0 %v3121_v26, %s2905_s13 }
 0x179   :  { %v407_v9 = vpop.permute.xlu1 %406  ;;  %v3252_v10 = vpop.permute.xlu0 %504 }
 0x17a   :  { %v584_v36 = vsel %vm3957_vm0, %v3067_v20, %v407_v9 }
 0x17b   :  { %181 = vrot.lane.b32.xlu1 %v3189_v44, %s2900_s9  ;;  %263 = vrot.lane.b32.xlu0 %v3113_v24, %s2906_s14 }
 0x17d   :  { %v419_v11 = vpop.permute.xlu1 %418  ;;  %v547_v12 = vpop.permute.xlu0 %546 }
 0x17e   :  { %v630_v13 = vsel %vm3959_vm12, %v626_v8, %v547_v12  ;;  %v588_v38 = vsel %vm3956_vm1, %v584_v36, %v419_v11 }
 0x17f   :  { %185 = vrot.lane.b32.xlu1 %v3204_v50, %s2900_s9  ;;  %267 = vrot.lane.b32.xlu0 %v3121_v26, %s2906_s14 }
 0x181   :  { %v431_v14 = vpop.permute.xlu1 %430  ;;  %v3263_v16 = vpop.permute.xlu0 %516 }
 0x182   :  { %v592_v41 = vsel %vm3955_vm2, %v588_v38, %v431_v14 }
 0x183   :  { %193 = vrot.lane.b32.xlu1 %v3189_v44, %s2902_s11  ;;  %275 = vrot.lane.b32.xlu0 %v3113_v24, %s2907_s15 }
 0x185   :  { %v443_v17 = vpop.permute.xlu1 %442  ;;  %v559_v19 = vpop.permute.xlu0 %558 }
 0x186   :  { %v634_v21 = vsel %vm3958_vm13, %v630_v13, %v559_v19  ;;  %v596_v45 = vsel %vm3954_vm3, %v592_v41, %v443_v17  ;;  %v3386_v41 = vand.u32 127, %v82_v0 }
 0x187   :  { %197 = vrot.lane.b32.xlu1 %v3204_v50, %s2902_s11  ;;  %279 = vrot.lane.b32.xlu0 %v3121_v26, %s2907_s15 }
 0x188   :  { %v649_v0 = vadd.s32 128, %v3386_v41 }
 0x189   :  { %v455_v22 = vpop.permute.xlu1 %454  ;;  %v529_v23 = vpop.permute.xlu0 %528 }
 0x18a   :  { %v600_v54 = vsel %vm343_vm4, %v596_v45, %v455_v22 }
 0x18b   :  { %205 = vrot.lane.b32.xlu1 %v3189_v44, %s2899_s8  ;;  %287 = vrot.lane.b32.xlu0 %v3113_v24, %s2908_s16 }
 0x18d   :  { %v467_v25 = vpop.permute.xlu1 %466  ;;  %v571_v27 = vpop.permute.xlu0 %570 }
 0x18e   :  { %v3279_v28 = vsel %vm393_vm14, %v634_v21, %v571_v27  ;;  %v604_v55 = vsel %vm348_vm5, %v600_v54, %v467_v25 }
 0x18f   :  { %209 = vrot.lane.b32.xlu1 %v3204_v50, %s2899_s8  ;;  %291 = vrot.lane.b32.xlu0 %v3121_v26, %s2908_s16 }
 0x191   :  { %v479_v29 = vpop.permute.xlu1 %478  ;;  %v541_v30 = vpop.permute.xlu0 %540 }
 0x192   :  { %v608_v59 = vsel %vm3953_vm6, %v604_v55, %v479_v29 }
 0x193   :  { %217 = vrot.lane.b32.xlu1 %v3189_v44, %s2901_s10  ;;  %299 = vrot.lane.b32.xlu0 %v3113_v24, %s2909_s17 }
 0x195   :  { %v491_v31 = vpop.permute.xlu1 %490  ;;  %v553_v32 = vpop.permute.xlu0 %552 }
 0x196   :  { %v612_v61 = vsel %vm3952_vm7, %v608_v59, %v491_v31 }
 0x197   :  { %221 = vrot.lane.b32.xlu1 %v3204_v50, %s2901_s10  ;;  %303 = vrot.lane.b32.xlu0 %v3121_v26, %s2909_s17 }
 0x199   :  { %v409_v33 = vpop.permute.xlu1 %408  ;;  %v565_v34 = vpop.permute.xlu0 %564 }
 0x19a   :  { %v585_v46 = vsel %vm3957_vm0, %v3032_v18, %v409_v33 }
 0x19b   :  { %229 = vrot.lane.b32.xlu1 %v3189_v44, %s2903_s12  ;;  %311 = vrot.lane.b32.xlu0 %v3113_v24, %s2910_s19 }
 0x19d   :  { %v421_v49 = vpop.permute.xlu1 %420  ;;  %v144_v51 = vpop.permute.xlu0 %143 }
 0x19e   :  { %v589_v20 = vsel %vm3956_vm1, %v585_v46, %v421_v49  ;;  %v324_v9 = vsel %vm3957_vm0, %v3113_v24, %v144_v51  ;;  %v650_v46 = vmul.u32 8, %v2994_v1 }
 0x19f   :  { %v593_v58 = vsel %vm3955_vm2, %v589_v20, %v3173_v40  ;;  %233 = vrot.lane.b32.xlu1 %v3204_v50, %s2903_s12  ;;  %315 = vrot.lane.b32.xlu0 %v3121_v26, %s2910_s19 }
 0x1a0   :  { %v597_v18 = vsel %vm3954_vm3, %v593_v58, %v3182_v43  ;;  %v587_v43 = vsel %vm3956_vm1, %v583_v7, %v3165_v37  ;;  %v3395_v58 = vadd.s32 16, %v2994_v1  ;;  %vm3402_vm15 = vcmp.ge.s32.totalorder %v3386_v41, %v650_v46 }
 0x1a1   :  { %v601_v62 = vsel %vm343_vm4, %v597_v18, %v3196_v48  ;;  %v503_v3 = vpop.permute.xlu1 %502  ;;  %v148_v4 = vpop.permute.xlu0 %147 }
 0x1a2   :  { %v605_v40 = vsel %vm348_vm5, %v601_v62, %v3209_v53  ;;  %v616_v5 = vsel %vm3951_vm8, %v612_v61, %v503_v3  ;;  %v591_v53 = vsel %vm3955_vm2, %v587_v43, %v3171_v39  ;;  %v326_v13 = vsel %vm3957_vm0, %v3121_v26, %v148_v4 }
 0x1a3   :  { %v609_v8 = vsel %vm3953_vm6, %v605_v40, %v3219_v57  ;;  %241 = vrot.lane.b32.xlu1 %v3189_v44, %s2904_s0  ;;  %v595_v57 = vsel %vm3954_vm3, %v591_v53, %v3180_v42  ;;  %v664_v7 = vadd.s32 1, %v3395_v58 }
 0x1a4   :  { %v613_v48 = vsel %vm3952_vm7, %v609_v8, %v3236_v2  ;;  %v599_v2 = vsel %vm343_vm4, %v595_v57, %v3194_v47 }
 0x1a5   :  { %v525_v11 = vpop.permute.xlu1 %524  ;;  %v156_v15 = vpop.permute.xlu0 %155  ;;  %v617_v35 = vsel %vm3951_vm8, %v613_v48, %v3252_v10  ;;  %v603_v39 = vsel %vm348_vm5, %v599_v2, %v3207_v52  ;;  %v652_v2 = vmul.u32 8, %v3395_v58 }
 0x1a6   :  { %v329_v12 = vsel %vm3956_vm1, %v324_v9, %v156_v15  ;;  %v621_v37 = vsel %vm3950_vm9, %v617_v35, %v3263_v16  ;;  %v607_v42 = vsel %vm3953_vm6, %v603_v39, %v3217_v56  ;;  %v3435_v9 = vadd.s32 24, %v2994_v1 }
 0x1a7   :  { %245 = vrot.lane.b32.xlu1 %v3204_v50, %s2904_s0  ;;  %v625_v24 = vsel %vm3949_vm10, %v621_v37, %v529_v23  ;;  %v611_v17 = vsel %vm3952_vm7, %v607_v42, %v3227_v60 }
 0x1a8   :  { %v629_v10 = vsel %vm3948_vm11, %v625_v24, %v541_v30  ;;  %v615_v56 = vsel %vm3951_vm8, %v611_v17, %v3234_v63  ;;  %v668_v24 = vmul.u32 8, %v664_v7  ;;  %v665_v39 = vadd.s32 1, %v3435_v9 }
 0x1a9   :  { %v515_v14 = vpop.permute.xlu1 %514  ;;  %v160_v16 = vpop.permute.xlu0 %159  ;;  %v633_v47 = vsel %vm3959_vm12, %v629_v10, %v553_v32  ;;  %v619_v26 = vsel %vm3950_vm9, %v615_v56, %v3245_v6  ;;  %v3380_v6 = vadd.s32 8, %v2994_v1 }
 0x1aa   :  { %v620_v19 = vsel %vm3950_vm9, %v616_v5, %v515_v14  ;;  %v331_v21 = vsel %vm3956_vm1, %v326_v13, %v160_v16  ;;  %v3362_v52 = vsel %vm3958_vm13, %v633_v47, %v565_v34  ;;  %v623_v22 = vsel %vm3949_vm10, %v619_v26, %v525_v11 }
 0x1ab   :  { %253 = vrot.lane.b32.xlu1 %v3189_v44, %s2905_s13  ;;  %v662_v34 = vadd.s32 1, %v2994_v1  ;;  %v663_v45 = vadd.s32 1, %v3380_v6  ;;  %v651_v59 = vmul.u32 8, %v3380_v6 }
 0x1ad   :  { %v537_v23 = vpop.permute.xlu1 %536  ;;  %v168_v60 = vpop.permute.xlu0 %167  ;;  %v666_v54 = vmul.u32 8, %v662_v34  ;;  %v667_v18 = vmul.u32 8, %v663_v45  ;;  %vm3425_vm8 = vcmp.ge.s32.totalorder %v3386_v41, %v651_v59 }
 0x1ae   :  { %v627_v25 = vsel %vm3948_vm11, %v623_v22, %v537_v23  ;;  %v334_v27 = vsel %vm3955_vm2, %v329_v12, %v168_v60  ;;  %v653_v23 = vmul.u32 8, %v3435_v9  ;;  %v669_v60 = vmul.u32 8, %v665_v39 }
 0x1af   :  { %257 = vrot.lane.b32.xlu1 %v3204_v50, %s2905_s13  ;;  %vm3418_vm9 = vcmp.lt.s32.totalorder %v649_v0, %v666_v54  ;;  %vm3430_vm7 = vcmp.lt.s32.totalorder %v3386_v41, %v667_v18 }
 0x1b0   :  { %vm680_vm0 = vmand %vm3425_vm8, %vm3430_vm7  ;;  %vm3479_vm7 = vcmp.lt.s32.totalorder %v3386_v41, %v668_v24  ;;  %vm3508_vm8 = vcmp.ge.s32.totalorder %v3386_v41, %v653_v23 }
 0x1b1   :  { %v527_v29 = vpop.permute.xlu1 %526  ;;  %v172_v30 = vpop.permute.xlu0 %171 }
 0x1b2   :  { %v624_v63 = vsel %vm3949_vm10, %v620_v19, %v527_v29  ;;  %v336_v31 = vsel %vm3955_vm2, %v331_v21, %v172_v30  ;;  %vm3414_vm10 = vcmp.ge.s32.totalorder %v649_v0, %v650_v46  ;;  %vm3445_vm2 = vcmp.lt.s32.totalorder %v649_v0, %v667_v18 }
 0x1b3   :  { %265 = vrot.lane.b32.xlu1 %v3189_v44, %s2906_s14  ;;  %vm679_vm1 = vmand %vm3414_vm10, %vm3418_vm9  ;;  %vm3513_vm9 = vcmp.lt.s32.totalorder %v3386_v41, %v669_v60  ;;  %vm661_vm10 = vcmp.ge.s32.totalorder %v649_v0, %v653_v23 }
 0x1b4   :  { %v687_v19 = vsel %vm679_vm1, %v3279_v28, 0.0 }
 0x1b5   :  { %v549_v32 = vpop.permute.xlu1 %548  ;;  %v180_v33 = vpop.permute.xlu0 %179 }
 0x1b6   :  { %v631_v36 = vsel %vm3959_vm12, %v627_v25, %v549_v32  ;;  %v339_v38 = vsel %vm3954_vm3, %v334_v27, %v180_v33 }
 0x1b7   :  { %269 = vrot.lane.b32.xlu1 %v3204_v50, %s2906_s14 }
 0x1b9   :  { %v539_v49 = vpop.permute.xlu1 %538  ;;  %v184_v51 = vpop.permute.xlu0 %183 }
 0x1ba   :  { %v628_v20 = vsel %vm3948_vm11, %v624_v63, %v539_v49  ;;  %v341_v55 = vsel %vm3954_vm3, %v336_v31, %v184_v51  ;;  %vm3407_vm11 = vcmp.lt.s32.totalorder %v3386_v41, %v666_v54  ;;  %vm3441_vm3 = vcmp.ge.s32.totalorder %v649_v0, %v651_v59 }
 0x1bb   :  { %277 = vrot.lane.b32.xlu1 %v3189_v44, %s2907_s15  ;;  %vm678_vm6 = vmand %vm3402_vm15, %vm3407_vm11  ;;  %vm677_vm11 = vcmp.lt.s32.totalorder %v649_v0, %v669_v60  ;;  %vm3985_vm15 = vcmask 64512  }
 0x1bc   :  { %v686_v17 = vsel %vm678_vm6, %v3279_v28, 0.0  ;;  %vm3980_vm6 = vcmask 916480  }
 0x1bd   :  { %v561_v62 = vpop.permute.xlu1 %560  ;;  %v192_v3 = vpop.permute.xlu0 %191 }
 0x1be   :  { %v635_v40 = vsel %vm3958_vm13, %v631_v36, %v561_v62  ;;  %v344_v5 = vsel %vm343_vm4, %v339_v38, %v192_v3  ;;  %vm681_vm13 = vmand %vm3441_vm3, %vm3445_vm2  ;;  %vm659_vm2 = vcmp.ge.s32.totalorder %v649_v0, %v652_v2  ;;  %vm675_vm3 = vcmp.lt.s32.totalorder %v649_v0, %v668_v24 }
 0x1bf   :  { %281 = vrot.lane.b32.xlu1 %v3204_v50, %s2907_s15  ;;  %vm683_vm1 = vmand %vm659_vm2, %vm675_vm3 }
 0x1c0   :  { %vm3987_vm2 = vmmov %vm3985_vm15 }
 0x1c1   :  { %v551_v11 = vpop.permute.xlu1 %550  ;;  %v196_v15 = vpop.permute.xlu0 %195 }
 0x1c2   :  { %v632_v12 = vsel %vm3959_vm12, %v628_v20, %v551_v11  ;;  %v3455_v37 = vsel %vm343_vm4, %v341_v55, %v196_v15  ;;  %vm3474_vm12 = vcmp.ge.s32.totalorder %v3386_v41, %v652_v2 }
 0x1c3   :  { %289 = vrot.lane.b32.xlu1 %v3189_v44, %s2908_s16 }
 0x1c5   :  { %v573_v10 = vpop.permute.xlu1 %572  ;;  %v204_v42 = vpop.permute.xlu0 %203 }
 0x1c6   :  { %v639_v13 = vsel %vm393_vm14, %v635_v40, %v573_v10  ;;  %v3471_v14 = vsel %vm348_vm5, %v344_v5, %v204_v42 }
 0x1c7   :  { %v688_v21 = vsel %vm680_vm0, %v639_v13, 0.0  ;;  %v689_v56 = vsel %vm681_vm13, %v639_v13, 0.0  ;;  %293 = vrot.lane.b32.xlu1 %v3204_v50, %s2908_s16  ;;  %vm682_vm0 = vmand %vm3474_vm12, %vm3479_vm7  ;;  %vm3986_vm7 = vcmask 130048  }
 0x1c8   :  { %v694_v26 = vadd.f32 %v688_v21, %v686_v17  ;;  %v703_v22 = vadd.f32 %v689_v56, %v687_v19  ;;  %vm684_vm12 = vmand %vm3508_vm8, %vm3513_vm9  ;;  %vm3993_vm9 = vcmask 457728  }
 0x1c9   :  { %v563_v25 = vpop.permute.xlu1 %562  ;;  %v3498_v27 = vpop.permute.xlu0 %207  ;;  %vm685_vm13 = vmand %vm661_vm10, %vm677_vm11  ;;  %vm3995_vm10 = vcmask 588800   ;;  %vm3996_vm11 = vcmask 654336  }
 0x1ca   :  { %v636_v29 = vsel %vm3980_vm6, %v632_v12, %v563_v25  ;;  %vm3988_vm3 = vmmov %vm3986_vm7  ;;  %vm3989_vm6 = vcmask 195584  }
 0x1cb   :  { %301 = vrot.lane.b32.xlu1 %v3189_v44, %s2909_s17 }
 0x1cd   :  { %v575_v63 = vpop.permute.xlu1 %574  ;;  %v3517_v31 = vpop.permute.xlu0 %215 }
 0x1ce   :  { %v640_v32 = vsel %vm393_vm14, %v636_v29, %v575_v63 }
 0x1cf   :  { %v690_v33 = vsel %vm682_vm0, %v640_v32, 0.0  ;;  %v691_v34 = vsel %vm683_vm1, %v640_v32, 0.0  ;;  %305 = vrot.lane.b32.xlu1 %v3204_v50, %s2909_s17  ;;  %vm3990_vm0 = vmmov %vm3989_vm6  ;;  %vm3991_vm1 = vcmask 261120  }
 0x1d0   :  { %v695_v36 = vadd.f32 %v694_v26, %v690_v33  ;;  %v704_v38 = vadd.f32 %v703_v22, %v691_v34  ;;  %vm3992_vm8 = vmmov %vm3991_vm1  ;;  %v354_v34 = vsel %vm3993_vm9, %v3471_v14, %v3517_v31 }
 0x1d1   :  { %v577_v45 = vpop.permute.xlu1 %576  ;;  %v3526_v46 = vpop.permute.xlu0 %219 }
 0x1d2   :  { %v641_v49 = vsel %vm393_vm14, %v3362_v52, %v577_v45  ;;  %v351_v45 = vsel %vm348_vm5, %v3455_v37, %v3498_v27 }
 0x1d3   :  { %v692_v51 = vsel %vm684_vm12, %v641_v49, 0.0  ;;  %v693_v54 = vsel %vm685_vm13, %v641_v49, 0.0  ;;  %313 = vrot.lane.b32.xlu1 %v3189_v44, %s2910_s19  ;;  %vm3997_vm12 = vmmov %vm3993_vm9  ;;  %vm3998_vm13 = vcmask 719872  }
 0x1d4   :  { %v696_v20 = vadd.f32 %v695_v36, %v692_v51  ;;  %v705_v55 = vadd.f32 %v704_v38, %v693_v54 }
 0x1d5   :  { %v146_v0 = vpop.permute.xlu1 %145  ;;  %v228_v59 = vpop.permute.xlu0 %227 }
 0x1d6   :  { %v325_v62 = vsel %vm3985_vm15, %v3189_v44, %v146_v0  ;;  %v697_v13 = vrot.slane %v696_v20, 4  ;;  %v706_v16 = vrot.slane %v705_v55, 4  ;;  %v356_v0 = vsel %vm3997_vm12, %v351_v45, %v3526_v46 }
 0x1d7   :  { %317 = vrot.lane.b32.xlu1 %v3204_v50, %s2910_s19 }
 0x1d8   :  { %v698_v21 = vadd.f32 %v697_v13, %v696_v20  ;;  %v707_v56 = vadd.f32 %v706_v16, %v705_v55 }
 0x1d9   :  { %v150_v18 = vpop.permute.xlu1 %149  ;;  %v232_v61 = vpop.permute.xlu0 %231 }
 0x1da   :  { %v327_v40 = vsel %vm3987_vm2, %v3204_v50, %v150_v18  ;;  %v699_v60 = vrot.slane %v698_v21, 2  ;;  %v708_v25 = vrot.slane %v707_v56, 2  ;;  %vm4001_vm2 = vmmov %vm3995_vm10 }
 0x1dc   :  { %v700_v30 = vadd.f32 %v699_v60, %v698_v21  ;;  %v709_v63 = vadd.f32 %v708_v25, %v707_v56 }
 0x1dd   :  { %v158_v3 = vpop.permute.xlu1 %157  ;;  %v240_v4 = vpop.permute.xlu0 %239 }
 0x1de   :  { %v330_v52 = vsel %vm3986_vm7, %v325_v62, %v158_v3  ;;  %v701_v49 = vrot.slane %v700_v30, 1  ;;  %v710_v51 = vrot.slane %v709_v63, 1  ;;  %vm4000_vm7 = vcmask 785408  }
 0x1e0   :  { %v702_v37 = vadd.f32 %v701_v49, %v700_v30  ;;  %v711_v27 = vadd.f32 %v710_v51, %v709_v63 }
 0x1e1   :  { %v162_v5 = vpop.permute.xlu1 %161  ;;  %v244_v7 = vpop.permute.xlu0 %243 }
 0x1e2   :  { %v332_v8 = vsel %vm3988_vm3, %v327_v40, %v162_v5  ;;  %vm4002_vm3 = vcmask 850944  }
 0x1e3   :  { %vm4007_vm9 = vmmov %vm4002_vm3 }
 0x1e5   :  { %v170_v43 = vpop.permute.xlu1 %169  ;;  %v252_v48 = vpop.permute.xlu0 %251 }
 0x1e6   :  { %v335_v53 = vsel %vm3989_vm6, %v330_v52, %v170_v43  ;;  %vm4003_vm6 = vmmov %vm3996_vm11 }
 0x1e9   :  { %v174_v11 = vpop.permute.xlu1 %173  ;;  %v256_v15 = vpop.permute.xlu0 %255 }
 0x1ea   :  { %v337_v35 = vsel %vm3990_vm0, %v332_v8, %v174_v11  ;;  %vm4004_vm0 = vcmask 916480  }
 0x1ed   :  { %v182_v44 = vpop.permute.xlu1 %181  ;;  %v264_v57 = vpop.permute.xlu0 %263 }
 0x1ee   :  { %v340_v12 = vsel %vm3991_vm1, %v335_v53, %v182_v44  ;;  %vm4005_vm1 = vmmov %vm3998_vm13 }
 0x1f1   :  { %v186_v2 = vpop.permute.xlu1 %185  ;;  %v268_v24 = vpop.permute.xlu0 %267 }
 0x1f2   :  { %v342_v50 = vsel %vm3992_vm8, %v337_v35, %v186_v2  ;;  %vm4006_vm8 = vmmov %vm4000_vm7 }
 0x1f5   :  { %v194_v39 = vpop.permute.xlu1 %193  ;;  %v276_v10 = vpop.permute.xlu0 %275 }
 0x1f6   :  { %v345_v42 = vsel %vm343_vm4, %v340_v12, %v194_v39 }
 0x1f9   :  { %v198_v47 = vpop.permute.xlu1 %197  ;;  %v280_v17 = vpop.permute.xlu0 %279 }
 0x1fa   :  { %v3546_v19 = vsel %vm343_vm4, %v342_v50, %v198_v47  ;;  %vm3994_vm4 = vcmask 523264  }
 0x1fb   :  { %v359_v36 = vsel %vm3994_vm4, %v354_v34, %v228_v59  ;;  %vm3999_vm15 = vmmov %vm3994_vm4 }
 0x1fc   :  { %v364_v38 = vsel %vm3995_vm10, %v359_v36, %v240_v4  ;;  %v361_v14 = vsel %vm3999_vm15, %v356_v0, %v232_v61  ;;  %vm4008_vm4 = vmmov %vm4004_vm0 }
 0x1fd   :  { %v206_v26 = vpop.permute.xlu1 %205  ;;  %v288_v22 = vpop.permute.xlu0 %287  ;;  %v369_v54 = vsel %vm3996_vm11, %v364_v38, %v252_v48  ;;  %v366_v59 = vsel %vm4001_vm2, %v361_v14, %v244_v7  ;;  %vm4009_vm10 = vmmov %vm3997_vm12 }
 0x1fe   :  { %v350_v23 = vsel %vm348_vm5, %v345_v42, %v206_v26  ;;  %v374_v18 = vsel %vm3998_vm13, %v369_v54, %v264_v57  ;;  %v371_v3 = vsel %vm4003_vm6, %v366_v59, %v256_v15  ;;  %vm4010_vm11 = vmmov %vm3999_vm15 }
 0x1ff   :  { %v379_v31 = vsel %vm4000_vm7, %v374_v18, %v276_v10  ;;  %v376_v46 = vsel %vm4005_vm1, %v371_v3, %v268_v24  ;;  %vm4011_vm12 = vmmov %vm4001_vm2 }
 0x200   :  { %v384_v62 = vsel %vm4002_vm3, %v379_v31, %v288_v22  ;;  %v381_v61 = vsel %vm4006_vm8, %v376_v46, %v280_v17  ;;  %vm4012_vm13 = vmmov %vm4003_vm6 }
 0x201   :  { %v210_v29 = vpop.permute.xlu1 %209  ;;  %v292_v28 = vpop.permute.xlu0 %291  ;;  %vm4013_vm15 = vmmov %vm4009_vm10 }
 0x202   :  { %v386_v7 = vsel %vm4007_vm9, %v381_v61, %v292_v28  ;;  %v352_v60 = vsel %vm348_vm5, %v3546_v19, %v210_v29  ;;  %vm4014_vm7 = vmmov %vm4005_vm1 }
 0x203   :  { %vm4015_vm2 = vmmov %vm4010_vm11 }
 0x204   :  { %vm4016_vm3 = vmmov %vm4006_vm8 }
 0x205   :  { %v218_v32 = vpop.permute.xlu1 %217  ;;  %v300_v33 = vpop.permute.xlu0 %299  ;;  %vm4017_vm6 = vmmov %vm4011_vm12 }
 0x206   :  { %v389_v4 = vsel %vm4004_vm0, %v384_v62, %v300_v33  ;;  %v355_v56 = vsel %vm4009_vm10, %v350_v23, %v218_v32  ;;  %vm4018_vm0 = vmmov %vm4007_vm9 }
 0x207   :  { %vm4019_vm1 = vmmov %vm4012_vm13 }
 0x208   :  { %vm4020_vm8 = vmmov %vm4008_vm4 }
 0x209   :  { %v222_v20 = vpop.permute.xlu1 %221  ;;  %v304_v55 = vpop.permute.xlu0 %303  ;;  %vm4021_vm5 = vmmov %vm4014_vm7 }
 0x20a   :  { %v391_v48 = vsel %vm4008_vm4, %v386_v7, %v304_v55  ;;  %v357_v30 = vsel %vm4013_vm15, %v352_v60, %v222_v20  ;;  %vm4022_vm9 = vmmov %vm4016_vm3 }
 0x20b   :  { %vm4023_vm4 = vmmov %vm4018_vm0 }
 0x20c   :  { %vm4024_vm10 = vmmov %vm4020_vm8 }
 0x20d   :  { %v230_v52 = vpop.permute.xlu1 %229  ;;  %v312_v40 = vpop.permute.xlu0 %311 }
 0x20e   :  { %v394_v5 = vsel %vm393_vm14, %v389_v4, %v312_v40  ;;  %v360_v26 = vsel %vm4010_vm11, %v355_v56, %v230_v52  ;;  %vm806_vm11 = vcmp.eq.s32.totalorder %v2994_v1, %v3386_v41 }
 0x20f   :  { %v3570_v8 = vmul.f32 %v702_v37, %v394_v5  ;;  %v3572_v43 = vmul.f32 %v711_v27, %v394_v5 }
 0x211   :  { %v234_v53 = vpop.permute.xlu1 %233  ;;  %v316_v11 = vpop.permute.xlu0 %315 }
 0x212   :  { %v396_v15 = vsel %vm393_vm14, %v391_v48, %v316_v11  ;;  %v362_v33 = vsel %vm4015_vm2, %v357_v30, %v234_v53  ;;  %vm809_vm2 = vcmp.eq.s32.totalorder %v3435_v9, %v3386_v41 }
 0x213   :  { %v3577_v35 = vmul.f32 %v702_v37, %v396_v15  ;;  %v3579_v44 = vmul.f32 %v711_v27, %v396_v15 }
 0x215   :  { %v720_v57 = vmax.f32 %v3570_v8, %v3577_v35  ;;  %v729_v12 = vmax.f32 %v3572_v43, %v3579_v44  ;;  %v242_v2 = vpop.permute.xlu1 %241 }
 0x216   :  { %v365_v22 = vsel %vm4011_vm12, %v360_v26, %v242_v2  ;;  %vm808_vm12 = vcmp.eq.s32.totalorder %v3395_v58, %v3386_v41 }
 0x219   :  { %v246_v24 = vpop.permute.xlu1 %245 }
 0x21a   :  { %v367_v23 = vsel %vm4017_vm6, %v362_v33, %v246_v24 }
 0x21d   :  { %v254_v50 = vpop.permute.xlu1 %253 }
 0x21e   :  { %v370_v25 = vsel %vm4012_vm13, %v365_v22, %v254_v50  ;;  %vm4025_vm13 = vcmask 261120  }
 0x21f   :  { %vm4026_vm15 = vmmov %vm4025_vm13 }
 0x221   :  { %v258_v39 = vpop.permute.xlu1 %257 }
 0x222   :  { %v372_v36 = vsel %vm4019_vm1, %v367_v23, %v258_v39 }
 0x225   :  { %v266_v10 = vpop.permute.xlu1 %265 }
 0x226   :  { %v375_v63 = vsel %vm4014_vm7, %v370_v25, %v266_v10  ;;  %vm4027_vm7 = vmmov %vm4025_vm13 }
 0x229   :  { %v270_v42 = vpop.permute.xlu1 %269 }
 0x22a   :  { %v377_v29 = vsel %vm4021_vm5, %v372_v36, %v270_v42 }
 0x22d   :  { %v278_v13 = vpop.permute.xlu1 %277 }
 0x22e   :  { %v380_v34 = vsel %vm4016_vm3, %v375_v63, %v278_v13  ;;  %vm4028_vm3 = vmmov %vm4027_vm7 }
 0x22f   :  { %vm4029_vm5 = vmmov %vm4028_vm3 }
 0x231   :  { %v282_v16 = vpop.permute.xlu1 %281 }
 0x232   :  { %v382_v49 = vsel %vm4022_vm9, %v377_v29, %v282_v16  ;;  %vm4030_vm9 = vmmov %vm4028_vm3 }
 0x235   :  { %v290_v47 = vpop.permute.xlu1 %289 }
 0x236   :  { %v385_v32 = vsel %vm4018_vm0, %v380_v34, %v290_v47 }
 0x239   :  { %v294_v17 = vpop.permute.xlu1 %293 }
 0x23a   :  { %v387_v20 = vsel %vm4023_vm4, %v382_v49, %v294_v17  ;;  %vm4031_vm4 = vmmov %vm4028_vm3 }
 0x23d   :  { %v302_v21 = vpop.permute.xlu1 %301 }
 0x23e   :  { %v390_v38 = vsel %vm4020_vm8, %v385_v32, %v302_v21 }
 0x241   :  { %v306_v28 = vpop.permute.xlu1 %305 }
 0x242   :  { %v392_v55 = vsel %vm4024_vm10, %v387_v20, %v306_v28  ;;  %vm4032_vm10 = vmmov %vm4028_vm3 }
 0x245   :  { %v314_v19 = vpop.permute.xlu1 %313 }
 0x246   :  { %v395_v45 = vsel %vm393_vm14, %v390_v38, %v314_v19 }
 0x247   :  { %v714_v51 = vmul.f32 %v702_v37, %v395_v45  ;;  %v715_v54 = vmul.f32 %v711_v27, %v395_v45 }
 0x249   :  { %v318_v0 = vpop.permute.xlu1 %317 }
 0x24a   :  { %v397_v18 = vsel %vm393_vm14, %v392_v55, %v318_v0  ;;  %vm807_vm14 = vcmp.eq.s32.totalorder %v3380_v6, %v3386_v41 }
 0x24b   :  { %v718_v14 = vmul.f32 %v702_v37, %v397_v18  ;;  %v719_v31 = vmul.f32 %v711_v27, %v397_v18 }
 0x24d   :  { %v721_v59 = vmax.f32 %v714_v51, %v718_v14  ;;  %v730_v62 = vmax.f32 %v715_v54, %v719_v31 }
 0x24f   :  { %v722_v3 = vmax.f32 %v720_v57, %v721_v59  ;;  %v731_v4 = vmax.f32 %v729_v12, %v730_v62 }
 0x251   :  { %v723_v52 = vrot.slane %v722_v3, 4  ;;  %v732_v40 = vrot.slane %v731_v4, 4 }
 0x253   :  { %v724_v46 = vmax.f32 %v722_v3, %v723_v52  ;;  %v733_v5 = vmax.f32 %v731_v4, %v732_v40 }
 0x255   :  { %v725_v61 = vrot.slane %v724_v46, 2  ;;  %v734_v7 = vrot.slane %v733_v5, 2 }
 0x257   :  { %v726_v48 = vmax.f32 %v724_v46, %v725_v61  ;;  %v735_v53 = vmax.f32 %v733_v5, %v734_v7 }
 0x259   :  { %v727_v11 = vrot.slane %v726_v48, 1  ;;  %v736_v15 = vrot.slane %v735_v53, 1 }
 0x25b   :  { %v728_v2 = vmax.f32 %v726_v48, %v727_v11  ;;  %v737_v24 = vmax.f32 %v735_v53, %v736_v15 }
 0x25d   :  { %v738_v50 = vsub.f32 %v3570_v8, %v728_v2  ;;  %v739_v37 = vsub.f32 %v3572_v43, %v737_v24  ;;  %v740_v27 = vsub.f32 %v714_v51, %v728_v2  ;;  %v741_v39 = vsub.f32 %v715_v54, %v737_v24 }
 0x25e   :  { %v742_v57 = vsub.f32 %v3577_v35, %v728_v2  ;;  %v743_v12 = vsub.f32 %v3579_v44, %v737_v24  ;;  %v744_v10 = vsub.f32 %v718_v14, %v728_v2  ;;  %v745_v42 = vsub.f32 %v719_v31, %v737_v24 }
 0x25f   :  { %v746_v13 = vmul.f32 1.442695, %v738_v50  ;;  %v748_v16 = vmul.f32 1.442695, %v739_v37  ;;  %v750_v47 = vmul.f32 1.442695, %v740_v27 }
 0x260   :  { %v752_v17 = vmul.f32 1.442695, %v741_v39  ;;  %v754_v21 = vmul.f32 1.442695, %v742_v57  ;;  %v756_v56 = vmul.f32 1.442695, %v743_v12 }
 0x261   :  { %2741 = vpow2.f32 %v746_v13  ;;  %v758_v8 = vmul.f32 1.442695, %v744_v10  ;;  %v760_v43 = vmul.f32 1.442695, %v745_v42 }
 0x262   :  { %2743 = vpow2.f32 %v748_v16 }
 0x263   :  { %2745 = vpow2.f32 %v750_v47 }
 0x264   :  { %2747 = vpow2.f32 %v752_v17 }
 0x265   :  { %2749 = vpow2.f32 %v754_v21 }
 0x266   :  { %2751 = vpow2.f32 %v756_v56 }
 0x267   :  { %2753 = vpow2.f32 %v758_v8 }
 0x268   :  { %2755 = vpow2.f32 %v760_v43 }
 0x26b   :  { %v2742_v35 = vpop.eup %2741 }
 0x26c   :  { %v2744_v44 = vpop.eup %2743 }
 0x26d   :  { %v2746_v26 = vpop.eup %2745 }
 0x26e   :  { %v2748_v22 = vpop.eup %2747  ;;  %v762_v60 = vadd.f32 %v2746_v26, %v2742_v35 }
 0x26f   :  { %v2750_v25 = vpop.eup %2749  ;;  %v771_v28 = vadd.f32 %v2748_v22, %v2744_v44 }
 0x270   :  { %v2752_v30 = vpop.eup %2751  ;;  %v763_v63 = vadd.f32 %v2750_v25, %v762_v60  ;;  %v2911_v60 = vmov 0.0  }
 0x271   :  { %v2754_v33 = vpop.eup %2753  ;;  %v772_v34 = vadd.f32 %v2752_v30, %v771_v28 }
 0x272   :  { %v2756_v23 = vpop.eup %2755  ;;  %v764_v32 = vadd.f32 %v2754_v33, %v763_v63 }
 0x273   :  { %v773_v36 = vadd.f32 %v2756_v23, %v772_v34 }
 0x274   :  { %v765_v38 = vrot.slane %v764_v32, 4 }
 0x275   :  { %v774_v19 = vrot.slane %v773_v36, 4 }
 0x276   :  { %v766_v29 = vadd.f32 %v765_v38, %v764_v32 }
 0x277   :  { %v775_v45 = vadd.f32 %v774_v19, %v773_v36 }
 0x278   :  { %v767_v49 = vrot.slane %v766_v29, 2 }
 0x279   :  { %v776_v51 = vrot.slane %v775_v45, 2 }
 0x27a   :  { %v768_v54 = vadd.f32 %v767_v49, %v766_v29 }
 0x27b   :  { %v777_v20 = vadd.f32 %v776_v51, %v775_v45 }
 0x27c   :  { %v769_v55 = vrot.slane %v768_v54, 1 }
 0x27d   :  { %v778_v0 = vrot.slane %v777_v20, 1 }
 0x27e   :  { %v770_v18 = vadd.f32 %v769_v55, %v768_v54 }
 0x27f   :  { %v779_v14 = vadd.f32 %v778_v0, %v777_v20 }
 0x280   :  { %2757 = vrcp.f32 %v770_v18 }
 0x281   :  { %2759 = vrcp.f32 %v779_v14 }
 0x28a   :  { %v2758_v31 = vpop.eup %2757 }
 0x28b   :  { %v2760_v59 = vpop.eup %2759  ;;  %v784_v62 = vmul.f32 %v2758_v31, %v2746_v26  ;;  %v781_v3 = vmul.f32 %v2758_v31, %v2742_v35  ;;  %v786_v4 = vmul.f32 %v2758_v31, %v2750_v25  ;;  %v788_v52 = vmul.f32 %v2758_v31, %v2754_v33 }
 0x28c   :  { %v785_v40 = vmul.f32 %v2760_v59, %v2748_v22  ;;  %v783_v46 = vmul.f32 %v2760_v59, %v2744_v44  ;;  %v787_v5 = vmul.f32 %v2760_v59, %v2752_v30  ;;  %v789_v61 = vmul.f32 %v2760_v59, %v2756_v23 }
 0x28e   :  { %v793_v7 = vadd.f32 %v785_v40, %v784_v62  ;;  %v790_v48 = vadd.f32 %v783_v46, %v781_v3  ;;  %v796_v53 = vadd.f32 %v787_v5, %v786_v4  ;;  %v799_v11 = vadd.f32 %v789_v61, %v788_v52  ;;  %v880_v46 = vld [vmem:[#allocation9] sm:$0xff]  ;;  %v881_v5 = vld [vmem:[#allocation9 + $0x8] sm:$0xff] }
 0x28f   :  { %v864_v62 = vstv %s79_s22  ;;  %v892_v61 = vand.u32 4294901760, %v880_v46 }
 0x290   :  { %794 = vadd.xlane.f32.xlu1 %v793_v7  ;;  %791 = vadd.xlane.f32.xlu0 %v790_v48  ;;  %v895_v7 = vand.u32 4294901760, %v881_v5  ;;  %v882_v48 = vld [vmem:[#allocation9 + $0x10] sm:$0xff] }
 0x294   :  { %797 = vadd.xlane.f32.xlu0 %v796_v53  ;;  %v883_v53 = vld [vmem:[#allocation9 + $0x18] sm:$0xff] }
 0x298   :  { %800 = vadd.xlane.f32.xlu0 %v799_v11  ;;  %v2912_v11 = vmov 0.0|0.0  }
 0x299   :  { %2515 = vmatprep.subr.bf16.mxu0 %v2912_v11  ;;  %2599 = vmatprep.subr.bf16.mxu1 %v2912_v11 }
 0x31d   :  { %v795_v15 = vpop.xlane.xlu1 %794  ;;  %v792_v2 = vpop.xlane.xlu0 %791 }
 0x31e   :  { %v803_v24 = vmul.f32 0.00390625, %v795_v15  ;;  %v802_v50 = vmul.f32 0.00390625, %v792_v2  ;;  %v898_v15 = vand.u32 4294901760, %v882_v48  ;;  %v901_v2 = vand.u32 4294901760, %v883_v53 }
 0x320   :  { %v811_v37 = vsel %vm807_vm14, %v803_v24, 0.0  ;;  %v810_v27 = vsel %vm806_vm11, %v802_v50, 0.0  ;;  %vm4033_vm14 = vmmov %vm4028_vm3 }
 0x321   :  { %v798_v39 = vpop.xlane.xlu0 %797  ;;  %v815_v12 = vsel %vm4025_vm13, %v811_v37, 0.0  ;;  %v814_v10 = vsel %vm4026_vm15, %v810_v27, 0.0  ;;  %vm4034_vm11 = vmmov %vm4028_vm3  ;;  %v979_v37 = vsub.f32 %v881_v5, %v895_v7  ;;  %v986_v27 = vsub.f32 %v882_v48, %v898_v15 }
 0x322   :  { %v804_v57 = vmul.f32 0.00390625, %v798_v39  ;;  %v816_v16 = vadd.f32 %v815_v12, %v814_v10  ;;  %vm4035_vm15 = vmmov %vm4028_vm3  ;;  %v993_v39 = vsub.f32 %v883_v53, %v901_v2  ;;  %v1406_v53 = vld [vmem:[#allocation9 + $0x30] sm:$0xff] }
 0x323   :  { %v980_v10 = vand.u32 4294901760, %v979_v37 }
 0x324   :  { %v812_v42 = vsel %vm808_vm12, %v804_v57, 0.0 }
 0x325   :  { %v817_v6 = vsel %vm4027_vm7, %v812_v42, 0.0  ;;  %v801_v13 = vpop.xlane.xlu0 %800  ;;  %vm2913_vm7 = vmmov 0  }
 0x326   :  { %v805_v47 = vmul.f32 0.00390625, %v801_v13  ;;  %v818_v17 = vadd.f32 %v817_v6, %v816_v16  ;;  %2247 = vmatprep.mubr.msk.f32.mxu0 %vm2913_vm7, %v2911_v60  ;;  %2407 = vmatprep.mubr.msk.f32.mxu1 %vm2913_vm7, %v2911_v60  ;;  %v981_v6 = vsub.f32 %v979_v37, %v980_v10 }
 0x328   :  { %v813_v21 = vsel %vm809_vm2, %v805_v47, 0.0  ;;  %v982_v16 = vand.u32 4294901760, %v981_v6 }
 0x329   :  { %v819_v56 = vsel %vm4028_vm3, %v813_v21, 0.0 }
 0x32a   :  { %v820_v58 = vadd.f32 %v819_v56, %v818_v17  ;;  %v994_v17 = vand.u32 4294901760, %v993_v39 }
 0x32c   :  { %v821_v8 = vrot.slane %v820_v58, 4 }
 0x32e   :  { %v822_v43 = vadd.f32 %v821_v8, %v820_v58  ;;  %v995_v58 = vsub.f32 %v993_v39, %v994_v17 }
 0x330   :  { %v823_v35 = vrot.slane %v822_v43, 2 }
 0x332   :  { %v824_v44 = vadd.f32 %v823_v35, %v822_v43  ;;  %v996_v43 = vand.u32 4294901760, %v995_v58  ;;  %v1413_v58 = vld [vmem:[#allocation9 + $0x68] sm:$0xff] }
 0x334   :  { %v825_v26 = vrot.slane %v824_v44, 1 }
 0x336   :  { %v826_v22 = vadd.f32 %v825_v26, %v824_v44  ;;  %v2531_v26 = vpack.c.bf16 %v993_v39, %v986_v27  ;;  %v1409_v39 = vld [vmem:[#allocation9 + $0x48] sm:$0xff] }
 0x338   :  { %vm839_vm6 = vcmp.gt.f32.partialorder %v802_v50, %v826_v22  ;;  %vm840_vm0 = vcmp.gt.f32.partialorder %v803_v24, %v826_v22  ;;  %vm841_vm1 = vcmp.gt.f32.partialorder %v804_v57, %v826_v22  ;;  %vm842_vm8 = vcmp.gt.f32.partialorder %v805_v47, %v826_v22 }
 0x339   :  { %v2103_v9 = vsel %vm839_vm6, 1.0, %v2911_v60  ;;  %v2104_v25 = vsel %vm840_vm0, 1.0, %v2911_v60  ;;  %v2105_v28 = vsel %vm841_vm1, 1.0, %v2911_v60  ;;  %v2106_v33 = vsel %vm842_vm8, 1.0, %v2911_v60  ;;  %vm4036_vm6 = vmmov %vm4028_vm3 }
 0x33a   :  { %v851_v30 = vsel %vm4029_vm5, %v2103_v9, 0.0  ;;  %v852_v63 = vsel %vm4030_vm9, %v2104_v25, 0.0  ;;  %v830_v23 = vsel %vm4031_vm4, %v826_v22, -inf  ;;  %v827_v32 = vsel %vm4032_vm10, %v826_v22, inf }
 0x33b   :  { %v853_v34 = vadd.f32 %v852_v63, %v851_v30  ;;  %v854_v36 = vsel %vm4033_vm14, %v2105_v28, 0.0  ;;  %831 = vmax.xlane.f32.xlu1 %v830_v23  ;;  %828 = vmin.xlane.f32.xlu0 %v827_v32  ;;  %v856_v19 = vsel %vm4034_vm11, %v2106_v33, 0.0  ;;  %v3635_v24 = vpack.c.bf16 %v895_v7, %v892_v61 }
 0x33c   :  { %v972_v50 = vsub.f32 %v880_v46, %v892_v61  ;;  %v3641_v57 = vpack.c.bf16 %v901_v2, %v898_v15  ;;  %v987_v47 = vand.u32 4294901760, %v986_v27  ;;  %v872_v28 = vstv %s77_s25  ;;  %v1405_v46 = vld [vmem:[#allocation9 + $0x28] sm:$0xff]  ;;  %v1407_v15 = vld [vmem:[#allocation9 + $0x38] sm:$0xff] }
 0x33d   :  { %v855_v38 = vadd.f32 %v854_v36, %v853_v34  ;;  %2517 = vmatpush3.bf16.msra.mxu0 %v3635_v24  ;;  %v876_v30 = vstv %s874_s26  ;;  %v2767_v36 = vld [vmem:[#allocation8] sm:$0xff]  ;;  %vm1379_vm0 = vcmp.lt.s32.totalorder %v3386_v41, 16  ;;  %v1428_v61 = vand.u32 4294901760, %v1405_v46 }
 0x33e   :  { %v973_v12 = vand.u32 4294901760, %v972_v50  ;;  %2518 = vmatprep.subr.bf16.mxu0 %v2912_v11  ;;  %v988_v56 = vsub.f32 %v986_v27, %v987_v47  ;;  %v2528_v44 = vpack.c.bf16 %v979_v37, %v972_v50  ;;  %v2543_v9 = vpack.c.bf16 %v994_v17, %v987_v47  ;;  %v1408_v27 = vld [vmem:[#allocation9 + $0x40] sm:$0xff] }
 0x33f   :  { %v857_v29 = vadd.f32 %v856_v19, %v855_v38  ;;  %v3685_v48 = vsub.f32 %v1405_v46, %v1428_v61  ;;  %v1431_v2 = vand.u32 4294901760, %v1406_v53  ;;  %v1412_v47 = vld [vmem:[#allocation9 + $0x60] sm:$0xff] }
 0x340   :  { %v974_v42 = vsub.f32 %v972_v50, %v973_v12  ;;  %v989_v8 = vand.u32 4294901760, %v988_v56 }
 0x341   :  { %v858_v45 = vrot.slane %v857_v29, 4  ;;  %2520 = vmatpush3.bf16.msra.mxu0 %v3641_v57  ;;  %v3689_v50 = vsub.f32 %v1406_v53, %v1431_v2 }
 0x342   :  { %v975_v13 = vand.u32 4294901760, %v974_v42  ;;  %2521 = vmatprep.subr.bf16.mxu0 %v2912_v11  ;;  %v2525_v35 = vpack.c.bf16 %v996_v43, %v989_v8  ;;  %v1414_v8 = vld [vmem:[#allocation9 + $0x70] sm:$0xff] }
 0x343   :  { %v859_v49 = vadd.f32 %v858_v45, %v857_v29 }
 0x344   :  { %v2522_v21 = vpack.c.bf16 %v982_v16, %v975_v13  ;;  %v1410_v13 = vld [vmem:[#allocation9 + $0x50] sm:$0xff]  ;;  %v1411_v16 = vld [vmem:[#allocation9 + $0x58] sm:$0xff] }
 0x345   :  { %v860_v20 = vrot.slane %v859_v49, 2  ;;  %v1446_v56 = vand.u32 4294901760, %v1411_v16 }
 0x347   :  { %v861_v18 = vadd.f32 %v860_v20, %v859_v49  ;;  %v886_v20 = vsub.s32 1, %v2994_v1 }
 0x349   :  { %v862_v14 = vrot.slane %v861_v18, 1 }
 0x34b   :  { %v863_v31 = vadd.f32 %v862_v14, %v861_v18 }
 0x34d   :  { %vm865_vm13 = vcmp.lt.f32.partialorder %v863_v31, %v864_v62 }
 0x3c8   :  { %v832_v51 = vpop.xlane.xlu1 %831  ;;  %v829_v54 = vpop.xlane.xlu0 %828 }
 0x3c9   :  { %v833_v55 = vsub.f32 %v832_v51, %v829_v54  ;;  %v836_v59 = vsub.f32 %v826_v22, %v829_v54  ;;  %v2540_v22 = vpack.c.bf16 %v980_v10, %v973_v12  ;;  %v1437_v12 = vand.u32 4294901760, %v1408_v27 }
 0x3ca   :  { %v1440_v10 = vand.u32 4294901760, %v1409_v39 }
 0x3cb   :  { %vm834_vm12 = vcmp.gt.f32.partialorder %v833_v55, 0.0  ;;  %v3698_v6 = vsub.f32 %v1408_v27, %v1437_v12 }
 0x3cc   :  { %v835_v0 = vsel %vm834_vm12, %v833_v55, 1.0  ;;  %v3675_v55 = vld [vmem:[#allocation9 + $0xa0] sm:$0xff]  ;;  %v3701_v17 = vsub.f32 %v1409_v39, %v1440_v10 }
 0x3cd   :  { %2761 = vrcp.f32 %v835_v0  ;;  %v887_v0 = vrot.slane %v3675_v55, %v886_v20  ;;  %v1419_v20 = vld [vmem:[#allocation9 + $0x98] sm:$0xff] }
 0x3d7   :  { %v2762_v3 = vpop.eup %2761 }
 0x3d8   :  { %v838_v4 = vmul.f32 %v2762_v3, %v836_v59 }
 0x3da   :  { %v866_v52 = vsel %vm865_vm13, %v838_v4, 1e+30  ;;  %v875_v25 = vadd.f32 0.1, %v838_v4 }
 0x3db   :  { %v867_v40 = vsel %vm4035_vm15, %v866_v52, inf }
 0x3dc   :  { %868 = vmin.xlane.f32.xlu0 %v867_v40  ;;  %v877_v34 = vmul.f32 %v876_v30, %v875_v25  ;;  %v1404_v40 = vld [vmem:[#allocation9 + $0x20] sm:$0xff]  ;;  %v3711_v25 = vsub.f32 %v1411_v16, %v1446_v56 }
 0x3dd   :  { %v1425_v5 = vand.u32 4294901760, %v1404_v40 }
 0x3df   :  { %v3683_v7 = vsub.f32 %v1404_v40, %v1425_v5  ;;  %v3696_v42 = vpack.c.bf16 %v1428_v61, %v1425_v5 }
 0x3e1   :  { %v2600_v41 = vpack.c.bf16 %v3685_v48, %v3683_v7  ;;  %v1518_v53 = vand.u32 4294901760, %v3683_v7 }
 0x3e3   :  { %2601 = vmatpush3.bf16.msra.mxu1 %v2600_v41 }
 0x3e4   :  { %2602 = vmatprep.subr.bf16.mxu1 %v2912_v11 }
 0x469   :  { %v869_v63 = vpop.xlane.xlu0 %868 }
 0x46a   :  { %vm870_vm2 = vcmp.lt.f32.partialorder %v838_v4, %v869_v63 }
 0x46b   :  { %v871_v33 = vsel %vm870_vm2, 0.0, %v838_v4 }
 0x46c   :  { %v873_v23 = vmul.f32 %v872_v28, %v871_v33  ;;  %v1455_v28 = vand.u32 4294901760, %v1414_v8 }
 0x46e   :  { %v878_v32 = vadd.f32 %v877_v34, %v873_v23  ;;  %v3721_v23 = vpack.c.bf16 %v1440_v10, %v1437_v12 }
 0x470   :  { %v879_v38 = vmul.f32 %v2767_v36, %v878_v32  ;;  %2066 = vst.msk [vmem:[#allocation12] sm:$0xff] %vm4028_vm3, %v878_v32  ;;  %v1416_v32 = vld [vmem:[#allocation9 + $0x80] sm:$0xff]  ;;  %v1417_v36 = vld [vmem:[#allocation9 + $0x88] sm:$0xff] }
 0x472   :  { %v889_v19 = vsel %vm4036_vm6, %v879_v38, 0  ;;  %v3724_v38 = vsub.f32 %v1414_v8, %v1455_v28 }
 0x473   :  { %v960_v29 = vand.u32 4294901760, %v889_v19 }
 0x475   :  { %v961_v45 = vsub.f32 %v889_v19, %v960_v29 }
 0x477   :  { %v962_v49 = vand.u32 4294901760, %v961_v45 }
 0x479   :  { %v963_v51 = vsub.f32 %v961_v45, %v962_v49 }
 0x47b   :  { %v964_v54 = vand.u32 4294901760, %v963_v51  ;;  %v1418_v51 = vld [vmem:[#allocation9 + $0x90] sm:$0xff] }
 0x47d   :  { %2248 = vmatmul.mubr.f32.vlgmr.msra.gmra.mrb[0].mxu0 %v964_v54 }
 0x47e   :  { %2523 = vmatpush3.bf16.msra.mxu0 %v2522_v21  ;;  %2258 = vmatprep.mubr.msk.f32.mxu0 %vm2913_vm7, %v2911_v60  ;;  %v1443_v21 = vand.u32 4294901760, %v1410_v13 }
 0x47f   :  { %2524 = vmatprep.subr.bf16.mxu0 %v2912_v11 }
 0x480   :  { %v3732_v54 = vpack.c.bf16 %v1446_v56, %v1443_v21 }
 0x482   :  { %2526 = vmatpush3.bf16.msra.mxu0 %v2525_v35  ;;  %v1449_v35 = vand.u32 4294901760, %v1412_v47 }
 0x483   :  { %2527 = vmatprep.subr.bf16.mxu0 %v2912_v11 }
 0x484   :  { %v3715_v63 = vsub.f32 %v1412_v47, %v1449_v35 }
 0x485   :  { %2259 = vmatmul.mubr.f32.vlgmr.msra.gmra.mrb[0].mxu0 %v960_v29 }
 0x486   :  { %2529 = vmatpush3.bf16.msra.mxu0 %v2528_v44  ;;  %2269 = vmatprep.mubr.msk.f32.mxu0 %vm2913_vm7, %v2911_v60  ;;  %v1452_v44 = vand.u32 4294901760, %v1413_v58 }
 0x487   :  { %2530 = vmatprep.subr.bf16.mxu0 %v2912_v11 }
 0x488   :  { %v3717_v33 = vsub.f32 %v1413_v58, %v1452_v44 }
 0x48a   :  { %2532 = vmatpush3.bf16.msra.mxu0 %v2531_v26  ;;  %v1415_v26 = vld [vmem:[#allocation9 + $0x78] sm:$0xff]  ;;  %v2612_v19 = vpack.c.bf16 %v3717_v33, %v3715_v63 }
 0x48b   :  { %2533 = vmatprep.subr.bf16.mxu0 %v2912_v11  ;;  %v1458_v34 = vand.u32 4294901760, %v1415_v26 }
 0x48d   :  { %2270 = vmatmul.mubr.f32.vlgmr.msra.gmra.mrb[0].mxu0 %v961_v45  ;;  %v1461_v45 = vand.u32 4294901760, %v1416_v32  ;;  %v3754_v46 = vpack.c.bf16 %v1458_v34, %v1455_v28 }
 0x48e   :  { %2535 = vmatpush3.bf16.msra.mxu0 %v3635_v24  ;;  %2280 = vmatprep.mubr.msk.f32.mxu0 %vm2913_vm7, %v2911_v60 }
 0x48f   :  { %2536 = vmatprep.subr.bf16.mxu0 %v2912_v11 }
 0x492   :  { %2538 = vmatpush3.bf16.msra.mxu0 %v3641_v57 }
 0x493   :  { %2539 = vmatprep.subr.bf16.mxu0 %v2912_v11 }
 0x495   :  { %2281 = vmatmul.mubr.f32.vlgmr.msra.gmra.mrb[0].mxu0 %v962_v49  ;;  %v1464_v49 = vand.u32 4294901760, %v1417_v36 }
 0x496   :  { %2541 = vmatpush3.bf16.msra.mxu0 %v2540_v22  ;;  %2291 = vmatprep.mubr.msk.f32.mxu0 %vm2913_vm7, %v2911_v60  ;;  %v2606_v22 = vpack.c.bf16 %v3701_v17, %v3698_v6 }
 0x497   :  { %2542 = vmatprep.subr.bf16.mxu0 %v2912_v11  ;;  %v3761_v61 = vpack.c.bf16 %v1464_v49, %v1461_v45 }
 0x49a   :  { %2544 = vmatpush3.bf16.msra.mxu0 %v2543_v9  ;;  %v3709_v9 = vsub.f32 %v1410_v13, %v1443_v21  ;;  %v1553_v21 = vand.u32 4294901760, %v3701_v17 }
 0x49b   :  { %2545 = vmatprep.subr.bf16.mxu0 %v2912_v11 }
 0x49c   :  { %v2609_v30 = vpack.c.bf16 %v3711_v25, %v3709_v9  ;;  %v1554_v8 = vsub.f32 %v3701_v17, %v1553_v21 }
 0x49d   :  { %2292 = vmatmul.mubr.f32.vlgmr.msra.gmra.mrb[0].mxu0 %v960_v29 }
 0x49e   :  { %2547 = vmatpush3.bf16.msra.mxu0 %v3635_v24  ;;  %2302 = vmatprep.mubr.msk.f32.mxu0 %vm2913_vm7, %v2911_v60  ;;  %v1434_v24 = vand.u32 4294901760, %v1407_v15 }
 0x49f   :  { %2548 = vmatprep.subr.bf16.mxu0 %v2912_v11 }
 0x4a0   :  { %v3691_v37 = vsub.f32 %v1407_v15, %v1434_v24  ;;  %v3704_v43 = vpack.c.bf16 %v1434_v24, %v1431_v2  ;;  %v1525_v15 = vand.u32 4294901760, %v3685_v48  ;;  %v1519_v2 = vsub.f32 %v3683_v7, %v1518_v53 }
 0x4a2   :  { %2550 = vmatpush3.bf16.msra.mxu0 %v3641_v57  ;;  %v2603_v57 = vpack.c.bf16 %v3691_v37, %v3689_v50  ;;  %v1526_v24 = vsub.f32 %v3685_v48, %v1525_v15  ;;  %v1520_v27 = vand.u32 4294901760, %v1519_v2  ;;  %v1539_v12 = vand.u32 4294901760, %v3691_v37 }
 0x4a3   :  { %2551 = vmatprep.subr.bf16.mxu0 %v2912_v11  ;;  %v1546_v48 = vand.u32 4294901760, %v3698_v6 }
 0x4a4   :  { %2604 = vmatpush3.bf16.msra.mxu1 %v2603_v57  ;;  %v1527_v39 = vand.u32 4294901760, %v1526_v24  ;;  %v1532_v57 = vand.u32 4294901760, %v3689_v50  ;;  %v1540_v16 = vsub.f32 %v3691_v37, %v1539_v12 }
 0x4a5   :  { %2303 = vmatmul.mubr.f32.vlgmr.msra.gmra.mrb[0].mxu0 %v960_v29  ;;  %2605 = vmatprep.subr.bf16.mxu1 %v2912_v11  ;;  %v3728_v29 = vsub.f32 %v1415_v26, %v1458_v34  ;;  %v1547_v58 = vsub.f32 %v3698_v6, %v1546_v48  ;;  %v1560_v26 = vand.u32 4294901760, %v3709_v9  ;;  %v1581_v6 = vand.u32 4294901760, %v3717_v33 }
 0x4a6   :  { %2337 = vmatprep.mubr.msk.f32.mxu0 %vm2913_vm7, %v2911_v60  ;;  %2553 = vmatpush3.bf16.msra.mxu0 %v3696_v42  ;;  %v3777_v10 = vpack.c.bf16 %v1527_v39, %v1520_v27  ;;  %v1533_v13 = vsub.f32 %v3689_v50, %v1532_v57  ;;  %v1541_v7 = vand.u32 4294901760, %v1540_v16  ;;  %v1567_v50 = vand.u32 4294901760, %v3711_v25 }
 0x4a7   :  { %2554 = vmatprep.subr.bf16.mxu0 %v2912_v11  ;;  %v1561_v37 = vsub.f32 %v3709_v9, %v1560_v26  ;;  %v1595_v9 = vand.u32 4294901760, %v3728_v29 }
 0x4a8   :  { %2607 = vmatpush3.bf16.msra.mxu1 %v2606_v22  ;;  %v1534_v47 = vand.u32 4294901760, %v1533_v13  ;;  %v1568_v28 = vsub.f32 %v3711_v25, %v1567_v50 }
 0x4a9   :  { %2608 = vmatprep.subr.bf16.mxu1 %v2912_v11 }
 0x4aa   :  { %2556 = vmatpush3.bf16.msra.mxu0 %v3704_v43  ;;  %v3783_v56 = vpack.c.bf16 %v1541_v7, %v1534_v47  ;;  %v1569_v34 = vand.u32 4294901760, %v1568_v28  ;;  %v3817_v47 = vpack.c.bf16 %v1525_v15, %v1518_v53 }
 0x4ab   :  { %2557 = vmatprep.subr.bf16.mxu0 %v2912_v11 }
 0x4ac   :  { %2610 = vmatpush3.bf16.msra.mxu1 %v2609_v30  ;;  %v1562_v30 = vand.u32 4294901760, %v1561_v37 }
 0x4ad   :  { %2611 = vmatprep.subr.bf16.mxu1 %v2912_v11 }
 0x4ae   :  { %2559 = vmatpush3.bf16.msra.mxu0 %v3721_v23 }
 0x4af   :  { %2560 = vmatprep.subr.bf16.mxu0 %v2912_v11 }
 0x4b0   :  { %2613 = vmatpush3.bf16.msra.mxu1 %v2612_v19  ;;  %v1582_v19 = vsub.f32 %v3717_v33, %v1581_v6 }
 0x4b1   :  { %2614 = vmatprep.subr.bf16.mxu1 %v2912_v11 }
 0x4b2   :  { %2562 = vmatpush3.bf16.msra.mxu0 %v3732_v54 }
 0x4b3   :  { %2563 = vmatprep.subr.bf16.mxu0 %v2912_v11 }
 0x578   :  { %v1372_v18 = vpop.f32.mrb[0].mxu0 }
 0x579   :  { %v2695_v14 = vadd.f32 %v1372_v18, %v887_v0  ;;  %v2304_v31 = vpop.f32.mrb[1].mxu0  ;;  %v1467_v0 = vand.u32 4294901760, %v1418_v51  ;;  %v2615_v18 = vpack.c.bf16 %v3728_v29, %v3724_v38 }
 0x57a   :  { %v3739_v31 = vsub.f32 %v1417_v36, %v1464_v49  ;;  %v3795_v36 = vpack.c.bf16 %v1569_v34, %v1562_v30  ;;  %v1583_v49 = vand.u32 4294901760, %v1582_v19  ;;  %v1391_v30 = vsub.s32 2, %v2994_v1 }
 0x57b   :  { %1376 = vadd.xlane.f32.xlu1 %v2695_v14  ;;  %2616 = vmatpush3.bf16.msra.mxu1 %v2615_v18 }
 0x57c   :  { %2617 = vmatprep.subr.bf16.mxu1 %v2912_v11 }
 0x608   :  { %v1377_v59 = vpop.xlane.xlu1 %1376 }
 0x609   :  { %v1378_v62 = vmul.f32 0.0625, %v1377_v59  ;;  %v1470_v59 = vand.u32 4294901760, %v1419_v20 }
 0x60b   :  { %v1380_v3 = vsub.f32 %v2695_v14, %v1378_v62  ;;  %v3737_v14 = vsub.f32 %v1416_v32, %v1461_v45  ;;  %v3743_v62 = vpack.c.bf16 %v1452_v44, %v1449_v35  ;;  %v3750_v40 = vsub.f32 %v1419_v20, %v1470_v59 }
 0x60c   :  { %v3769_v41 = vpack.c.bf16 %v1470_v59, %v1467_v0  ;;  %v1548_v35 = vand.u32 4294901760, %v1547_v58  ;;  %v1555_v44 = vand.u32 4294901760, %v1554_v8  ;;  %v1574_v32 = vand.u32 4294901760, %v3715_v63 }
 0x60d   :  { %v3679_v4 = vsel %vm1379_vm0, %v1380_v3, 0.0  ;;  %v2618_v3 = vpack.c.bf16 %v3739_v31, %v3737_v14  ;;  %2565 = vmatpush3.bf16.msra.mxu0 %v3743_v62 }
 0x60e   :  { %v1382_v52 = vmul.f32 %v3679_v4, %v3679_v4  ;;  %2566 = vmatprep.subr.bf16.mxu0 %v2912_v11  ;;  %v3789_v22 = vpack.c.bf16 %v1555_v44, %v1548_v35  ;;  %v1575_v17 = vsub.f32 %v3715_v63, %v1574_v32  ;;  %v1609_v63 = vand.u32 4294901760, %v3739_v31 }
 0x60f   :  { %2619 = vmatpush3.bf16.msra.mxu1 %v2618_v3  ;;  %v1602_v3 = vand.u32 4294901760, %v3737_v14  ;;  %v3825_v35 = vpack.c.bf16 %v1567_v50, %v1560_v26  ;;  %v3827_v44 = vpack.c.bf16 %v1581_v6, %v1574_v32 }
 0x610   :  { %1383 = vadd.xlane.f32.xlu0 %v1382_v52  ;;  %v3748_v52 = vsub.f32 %v1418_v51, %v1467_v0  ;;  %2620 = vmatprep.subr.bf16.mxu1 %v2912_v11  ;;  %v1576_v45 = vand.u32 4294901760, %v1575_v17  ;;  %v1588_v51 = vand.u32 4294901760, %v3724_v38  ;;  %v1596_v0 = vsub.f32 %v3728_v29, %v1595_v9 }
 0x611   :  { %2568 = vmatpush3.bf16.msra.mxu0 %v3754_v46  ;;  %v1603_v33 = vsub.f32 %v3737_v14, %v1602_v3  ;;  %v1610_v2 = vsub.f32 %v3739_v31, %v1609_v63  ;;  %v3821_v14 = vpack.c.bf16 %v1539_v12, %v1532_v57  ;;  %v3823_v31 = vpack.c.bf16 %v1553_v21, %v1546_v48 }
 0x612   :  { %v2621_v5 = vpack.c.bf16 %v3750_v40, %v3748_v52  ;;  %2569 = vmatprep.subr.bf16.mxu0 %v2912_v11  ;;  %v3801_v20 = vpack.c.bf16 %v1583_v49, %v1576_v45  ;;  %v1589_v25 = vsub.f32 %v3724_v38, %v1588_v51  ;;  %v1597_v59 = vand.u32 4294901760, %v1596_v0 }
 0x613   :  { %v1604_v24 = vand.u32 4294901760, %v1603_v33  ;;  %v1611_v27 = vand.u32 4294901760, %v1610_v2  ;;  %v1616_v39 = vand.u32 4294901760, %v3748_v52  ;;  %v1623_v38 = vand.u32 4294901760, %v3750_v40 }
 0x614   :  { %2622 = vmatpush3.bf16.msra.mxu1 %v2621_v5  ;;  %v1590_v18 = vand.u32 4294901760, %v1589_v25  ;;  %v3829_v37 = vpack.c.bf16 %v1595_v9, %v1588_v51  ;;  %v3831_v28 = vpack.c.bf16 %v1609_v63, %v1602_v3  ;;  %v1396_v57 = vsub.s32 3, %v2994_v1 }
 0x615   :  { %2571 = vmatpush3.bf16.msra.mxu0 %v3761_v61  ;;  %2623 = vmatprep.subr.bf16.mxu1 %v2912_v11  ;;  %v3813_v13 = vpack.c.bf16 %v1611_v27, %v1604_v24  ;;  %v1617_v29 = vsub.f32 %v3748_v52, %v1616_v39  ;;  %v1624_v16 = vsub.f32 %v3750_v40, %v1623_v38 }
 0x616   :  { %2572 = vmatprep.subr.bf16.mxu0 %v2912_v11  ;;  %v3807_v5 = vpack.c.bf16 %v1597_v59, %v1590_v18  ;;  %v3833_v52 = vpack.c.bf16 %v1623_v38, %v1616_v39  ;;  %v1392_v12 = vrot.slane %v3675_v55, %v1391_v30  ;;  %v1397_v26 = vrot.slane %v3675_v55, %v1396_v57 }
 0x617   :  { %v1618_v7 = vand.u32 4294901760, %v1617_v29  ;;  %v1625_v58 = vand.u32 4294901760, %v1624_v16 }
 0x619   :  { %2574 = vmatpush3.bf16.msra.mxu0 %v3769_v41  ;;  %v3819_v8 = vpack.c.bf16 %v1625_v58, %v1618_v7 }
 0x61a   :  { %2575 = vmatprep.subr.bf16.mxu0 %v2912_v11 }
 0x69d   :  { %v1384_v40 = vpop.xlane.xlu0 %1383 }
 0x69e   :  { %v1385_v53 = vmul.f32 0.0625, %v1384_v40 }
 0x6a0   :  { %v1386_v15 = vadd.f32 1e-05, %v1385_v53 }
 0x6a2   :  { %2763 = vrsqrt.f32 %v1386_v15 }
 0x6ac   :  { %v2764_v48 = vpop.eup %2763 }
 0x6ad   :  { %v1388_v21 = vmul.f32 %v2764_v48, %v3679_v4 }
 0x6af   :  { %v1393_v50 = vmul.f32 %v1392_v12, %v1388_v21 }
 0x6b1   :  { %v1398_v34 = vadd.f32 %v1397_v26, %v1393_v50 }
 0x6b3   :  { %v1400_v32 = vmul.f32 0.70710677, %v1398_v34  ;;  %v1399_v17 = vmul.f32 0.5, %v1398_v34 }
 0x6b5   :  { %2765 = verf.f32 %v1400_v32 }
 0x6bf   :  { %v2766_v6 = vpop.eup %2765 }
 0x6c0   :  { %v1402_v19 = vadd.f32 1.0, %v2766_v6 }
 0x6c2   :  { %v1403_v45 = vmul.f32 %v1402_v19, %v1399_v17 }
 0x6c4   :  { %v3840_v49 = vand.u32 4294901760, %v1403_v45 }
 0x6c6   :  { %v1506_v51 = vsub.f32 %v1403_v45, %v3840_v49 }
 0x6c8   :  { %v1507_v9 = vand.u32 4294901760, %v1506_v51  ;;  %2408 = vmatmul.mubr.f32.vlgmr.msra.gmra.mrb[0].mxu1 %v1506_v51 }
 0x6c9   :  { %2625 = vmatpush3.bf16.msra.mxu1 %v3696_v42  ;;  %2442 = vmatprep.mubr.msk.f32.mxu1 %vm2913_vm7, %v2911_v60 }
 0x6ca   :  { %2626 = vmatprep.subr.bf16.mxu1 %v2912_v11  ;;  %v1508_v4 = vsub.f32 %v1506_v51, %v1507_v9 }
 0x6cc   :  { %v1509_v25 = vand.u32 4294901760, %v1508_v4 }
 0x6cd   :  { %2628 = vmatpush3.bf16.msra.mxu1 %v3704_v43 }
 0x6ce   :  { %2338 = vmatmul.mubr.f32.vlgmr.msra.gmra.mrb[2].mxu0 %v1509_v25  ;;  %2629 = vmatprep.subr.bf16.mxu1 %v2912_v11 }
 0x6cf   :  { %2577 = vmatpush3.bf16.msra.mxu0 %v3777_v10  ;;  %2372 = vmatprep.mubr.msk.f32.mxu0 %vm2913_vm7, %v2911_v60 }
 0x6d0   :  { %2578 = vmatprep.subr.bf16.mxu0 %v2912_v11 }
 0x6d1   :  { %2631 = vmatpush3.bf16.msra.mxu1 %v3721_v23 }
 0x6d2   :  { %2632 = vmatprep.subr.bf16.mxu1 %v2912_v11 }
 0x6d3   :  { %2580 = vmatpush3.bf16.msra.mxu0 %v3783_v56 }
 0x6d4   :  { %2581 = vmatprep.subr.bf16.mxu0 %v2912_v11 }
 0x6d5   :  { %2634 = vmatpush3.bf16.msra.mxu1 %v3732_v54 }
 0x6d6   :  { %2635 = vmatprep.subr.bf16.mxu1 %v2912_v11 }
 0x6d7   :  { %2583 = vmatpush3.bf16.msra.mxu0 %v3789_v22 }
 0x6d8   :  { %2584 = vmatprep.subr.bf16.mxu0 %v2912_v11 }
 0x6d9   :  { %2637 = vmatpush3.bf16.msra.mxu1 %v3743_v62 }
 0x6da   :  { %2638 = vmatprep.subr.bf16.mxu1 %v2912_v11 }
 0x6db   :  { %2586 = vmatpush3.bf16.msra.mxu0 %v3795_v36 }
 0x6dc   :  { %2587 = vmatprep.subr.bf16.mxu0 %v2912_v11 }
 0x6dd   :  { %2640 = vmatpush3.bf16.msra.mxu1 %v3754_v46 }
 0x6de   :  { %2641 = vmatprep.subr.bf16.mxu1 %v2912_v11 }
 0x6df   :  { %2589 = vmatpush3.bf16.msra.mxu0 %v3801_v20 }
 0x6e0   :  { %2590 = vmatprep.subr.bf16.mxu0 %v2912_v11 }
 0x6e1   :  { %2643 = vmatpush3.bf16.msra.mxu1 %v3761_v61 }
 0x6e2   :  { %2644 = vmatprep.subr.bf16.mxu1 %v2912_v11 }
 0x6e3   :  { %2592 = vmatpush3.bf16.msra.mxu0 %v3807_v5 }
 0x6e4   :  { %2593 = vmatprep.subr.bf16.mxu0 %v2912_v11 }
 0x6e5   :  { %2646 = vmatpush3.bf16.msra.mxu1 %v3769_v41 }
 0x6e6   :  { %2647 = vmatprep.subr.bf16.mxu1 %v2912_v11 }
 0x6e7   :  { %2595 = vmatpush3.bf16.msra.mxu0 %v3813_v13 }
 0x6e8   :  { %2443 = vmatmul.mubr.f32.vlgmr.msra.gmra.mrb[0].mxu1 %v1507_v9  ;;  %2596 = vmatprep.subr.bf16.mxu0 %v2912_v11 }
 0x6e9   :  { %2649 = vmatpush3.bf16.msra.mxu1 %v3817_v47  ;;  %2477 = vmatprep.mubr.msk.f32.mxu1 %vm2913_vm7, %v2911_v60 }
 0x6ea   :  { %2650 = vmatprep.subr.bf16.mxu1 %v2912_v11 }
 0x6eb   :  { %2598 = vmatpush3.bf16.msra.mxu0 %v3819_v8 }
 0x6ed   :  { %2652 = vmatpush3.bf16.msra.mxu1 %v3821_v14 }
 0x6ee   :  { %2373 = vmatmul.mubr.f32.vlgmr.msra.gmra.mrb[2].mxu0 %v3840_v49  ;;  %2653 = vmatprep.subr.bf16.mxu1 %v2912_v11 }
 0x6f1   :  { %2655 = vmatpush3.bf16.msra.mxu1 %v3823_v31 }
 0x6f2   :  { %2656 = vmatprep.subr.bf16.mxu1 %v2912_v11 }
 0x6f5   :  { %2658 = vmatpush3.bf16.msra.mxu1 %v3825_v35 }
 0x6f6   :  { %2659 = vmatprep.subr.bf16.mxu1 %v2912_v11 }
 0x6f9   :  { %2661 = vmatpush3.bf16.msra.mxu1 %v3827_v44 }
 0x6fa   :  { %2662 = vmatprep.subr.bf16.mxu1 %v2912_v11 }
 0x6fd   :  { %2664 = vmatpush3.bf16.msra.mxu1 %v3829_v37 }
 0x6fe   :  { %2665 = vmatprep.subr.bf16.mxu1 %v2912_v11 }
 0x701   :  { %2667 = vmatpush3.bf16.msra.mxu1 %v3831_v28 }
 0x702   :  { %2668 = vmatprep.subr.bf16.mxu1 %v2912_v11 }
 0x705   :  { %2670 = vmatpush3.bf16.msra.mxu1 %v3833_v52 }
 0x706   :  { %2671 = vmatprep.subr.bf16.mxu1 %v2912_v11 }
 0x708   :  { %2478 = vmatmul.mubr.f32.vlgmr.msra.gmra.mrb[0].mxu1 %v3840_v49 }
 0x709   :  { %2673 = vmatpush3.bf16.msra.mxu1 %v3696_v42  ;;  %2512 = vmatprep.mubr.msk.f32.mxu1 %vm2913_vm7, %v2911_v60 }
 0x70a   :  { %2674 = vmatprep.subr.bf16.mxu1 %v2912_v11 }
 0x70d   :  { %2676 = vmatpush3.bf16.msra.mxu1 %v3704_v43 }
 0x70e   :  { %2677 = vmatprep.subr.bf16.mxu1 %v2912_v11 }
 0x711   :  { %2679 = vmatpush3.bf16.msra.mxu1 %v3721_v23 }
 0x712   :  { %2680 = vmatprep.subr.bf16.mxu1 %v2912_v11 }
 0x715   :  { %2682 = vmatpush3.bf16.msra.mxu1 %v3732_v54 }
 0x716   :  { %2683 = vmatprep.subr.bf16.mxu1 %v2912_v11 }
 0x719   :  { %2685 = vmatpush3.bf16.msra.mxu1 %v3743_v62 }
 0x71a   :  { %2686 = vmatprep.subr.bf16.mxu1 %v2912_v11 }
 0x71d   :  { %2688 = vmatpush3.bf16.msra.mxu1 %v3754_v46 }
 0x71e   :  { %2689 = vmatprep.subr.bf16.mxu1 %v2912_v11 }
 0x721   :  { %2691 = vmatpush3.bf16.msra.mxu1 %v3761_v61 }
 0x722   :  { %2692 = vmatprep.subr.bf16.mxu1 %v2912_v11 }
 0x725   :  { %2694 = vmatpush3.bf16.msra.mxu1 %v3769_v41 }
 0x728   :  { %2513 = vmatmul.mubr.f32.vlgmr.msra.gmra.mrb[0].mxu1 %v3840_v49 }
 0x729   :  { %2846 = shalt.err (!%p2843_p1)
}
 0x72a   :  { %s2847_s3 = scalar_lea.hbm %s3947_s5, 128 }
 0x72b   :  { %p2848_p2 = scmp.ne.s32.totalorder %s3947_s5, %s2847_s3  ;;  %p2851_p3 = scmp.lt.u32.totalorder %s2847_s3, %s3947_s5 }
 0x72d   :  { %p2853_p4 = pnand %p2851_p3, %p2848_p2 }
 0x72f   :  { %2856 = shalt.err (!%p2853_p4)
}
 0x730   :  { %2086 = dma.vmem_to_hbm [thread:$0]  %s2084_s2, 128, %s3947_s5, [#allocation13]   ;;  %v1422_v42 = vsub.s32 4, %v2994_v1 }
 0x731   :  { %s2915_s11 = smov [#allocation11]  }
 0x732   :  { %v1423_v43 = vrot.slane %v3675_v55, %v1422_v42  ;;  %s2073_s12 = sshll.u32 %s2915_s11, 4  ;;  %s2074_s12 = int_to_ptr.vmem [resolvable:$true] %s2073_s12 }
 0x733   :  { %s2857_s0 = scalar_lea.vmem %s2074_s12, 128  ;;  %p2862_p6 = scmp.lt.s32.totalorder %s2074_s12, %s2074_s12 }
 0x734   :  { %p2858_p5 = scmp.ne.s32.totalorder %s2074_s12, %s2857_s0  ;;  %p2863_p7 = scmp.lt.s32.totalorder %s2857_s0, %s2857_s0 }
 0x736   :  { %p2864_p8 = por %p2863_p7, %p2862_p6 }
 0x738   :  { %p2865_p9 = pnand %p2864_p8, %p2858_p5 }
 0x7c1   :  { %v1662_v60 = vpop.f32.mrb[2].mxu0 }
 0x7c2   :  { %v2374_v11 = vpop.f32.mrb[3].mxu0  ;;  %v2696_v23 = vadd.f32 %v1662_v60, %v1423_v43 }
 0x7fb   :  { %v2061_v54 = vpop.f32.mrb[0].mxu1 }
 0x7fc   :  { %v2697_v62 = vadd.f32 %v2696_v23, %v2061_v54  ;;  %v2514_v46 = vpop.f32.mrb[1].mxu1 }
 0x7fe   :  { %2065 = vst [vmem:[#allocation11] sm:$0xff] %v2697_v62 }
 0x7ff   :  { %2868 = shalt.err (!%p2865_p9)
}
 0x800   :  { %s2869_s14 = scalar_lea.hbm %s3946_s4, 128 }
 0x801   :  { %p2870_p10 = scmp.ne.s32.totalorder %s3946_s4, %s2869_s14  ;;  %p2873_p11 = scmp.lt.u32.totalorder %s2869_s14, %s3946_s4 }
 0x803   :  { %p2875_p12 = pnand %p2873_p11, %p2870_p10 }
 0x805   :  { %2878 = shalt.err (!%p2875_p12)
}
 0x806   :  { %2076 = dma.vmem_to_hbm [thread:$0]  %s2074_s12, 128, %s3946_s4, [#allocation4]  }
 0x807   :  { %2887 = dma.done.wait [#allocation4], 128  }
 0x808   :  { %2888 = vsyncadd [#allocation4], 4294967168 }
 0x809   :  { %2889 = dma.done.wait [#allocation13], 128  }
 0x80a   :  { %2890 = vsyncadd [#allocation13], 4294967168 }
 0x80b   :  { %2093 = vsyncpa [#allocation3], 1 }
 0x80c   :  { %2094 = vsyncpa [#allocation10], 1 }
 0x80d   :  { %2095 = vsyncpa [#allocation4], 1 }
 0x80e   :  { %2096 = vsyncpa [#allocation13], 1 }
 0x80f   :  { %2097 = vsyncpa [#allocation5], 1 }
 0x810   :  { %2098 = vsyncpa [#allocation6], 1 }

</bundles_post_ra>
